<compile_context>
chip_gen: v7x
topology: tpu7x:2x2x1
jax: 0.10.0
libtpu: 0.0.40
codegen_flags: <defaults>
</compile_context>

<pallas_src>
import functools

import jax
import jax.numpy as jnp
from jax import lax
from jax.experimental import pallas as pl
from jax.experimental.pallas import tpu as pltpu

LANE = 128  # lane-dense padding width for the 2-way action head


# ----------------------------------------------------------------------------
# shared in-kernel math
# ----------------------------------------------------------------------------
def _res_layer(x, w_ref, b_ref):
    """ResLayer: x + relu(x @ W + b).  x f32, W bf16 (MXU), accumulate f32."""
    h = jnp.dot(x.astype(w_ref.dtype), w_ref[...],
                preferred_element_type=jnp.float32) + b_ref[...]
    return x + jnp.maximum(h, 0.0)


def _act_logits(x, w1_ref, b1_ref, w2_ref, b2_ref):
    """act_scorer = ResLayer(E) -> Linear(E, 2) (padded to LANE columns)."""
    h = _res_layer(x, w1_ref, b1_ref)
    return jnp.dot(h.astype(w2_ref.dtype), w2_ref[...],
                   preferred_element_type=jnp.float32) + b2_ref[...]


# ----------------------------------------------------------------------------
# kernel 1: whole decode loop on device (statically known number of steps)
# ----------------------------------------------------------------------------
def _make_decode_kernel(n_steps, use_fixed_actions, buffer_length):
    def kernel(act_in_ref,                       # SMEM (n_steps,) i32 (schedule)
               x_ref,                            # VMEM (1,E) f32 input encoding
               as_w1, as_b1, as_w2, as_b2,       # act_scorer weights
               ul_w1, ul_b1, ul_w2, ul_b2,       # unreduce_l weights
               ur_w1, ur_b1, ur_w2, ur_b2,       # unreduce_r weights
               buf_ref,                          # out VMEM (n_shift, E) f32
               logits_ref,                       # out VMEM (n_steps, LANE) f32
               stack_ref,                        # scratch VMEM (max_depth, E) f32
               ptr_ref):                         # scratch SMEM (2,) i32: [sp, bp]
        # init: stack = [input_encoding]
        stack_ref[pl.ds(0, 1), :] = x_ref[...]
        ptr_ref[0] = jnp.int32(1)                # stack size
        ptr_ref[1] = jnp.int32(0)                # buffer size

        def step(t, carry):
            sp = ptr_ref[0]
            bp = ptr_ref[1]
            top = stack_ref[pl.ds(sp - 1, 1), :]                      # (1, E)

            logits = _act_logits(top, as_w1, as_b1, as_w2, as_b2)     # (1, LANE)
            logits_ref[pl.ds(t, 1), :] = logits

            if use_fixed_actions:
                act = act_in_ref[t]
            else:
                # buffer_length forcing + greedy argmax over the 2 real logits
                bl = buffer_length
                diff = logits[:, 1:2] - logits[:, 0:1]                # (1, 1)
                greedy = (jnp.max(diff) > 0.0).astype(jnp.int32)
                act = jnp.where(jnp.logical_and(sp == 1, bp + 1 < bl), 1,
                                jnp.where(sp + bp == bl, 0, greedy))

            @pl.when(act == 0)                                        # shift
            def _shift():
                buf_ref[pl.ds(bp, 1), :] = top
                ptr_ref[0] = sp - 1
                ptr_ref[1] = bp + 1

            @pl.when(act == 1)                                        # reduce
            def _reduce():
                l = _res_layer(_res_layer(top, ul_w1, ul_b1), ul_w2, ul_b2)
                r = _res_layer(_res_layer(top, ur_w1, ur_b1), ur_w2, ur_b2)
                stack_ref[pl.ds(sp - 1, 1), :] = r                    # below
                stack_ref[pl.ds(sp, 1), :] = l                        # new top
                ptr_ref[0] = sp + 1

            return carry

        lax.fori_loop(0, n_steps, step, 0)

    return kernel


# ----------------------------------------------------------------------------
# kernel 2: fused single step (fallback when termination is data-dependent)
# ----------------------------------------------------------------------------
def _fused_step_kernel(x_ref,
                       as_w1, as_b1, as_w2, as_b2,
                       ul_w1, ul_b1, ul_w2, ul_b2,
                       ur_w1, ur_b1, ur_w2, ur_b2,
                       logits_ref, l_ref, r_ref):
    x = x_ref[...]
    logits_ref[...] = _act_logits(x, as_w1, as_b1, as_w2, as_b2)
    l_ref[...] = _res_layer(_res_layer(x, ul_w1, ul_b1), ul_w2, ul_b2)
    r_ref[...] = _res_layer(_res_layer(x, ur_w1, ur_b1), ur_w2, ur_b2)


# ----------------------------------------------------------------------------
# pallas_call builders
# ----------------------------------------------------------------------------
def _full_spec(shape):
    zeros = (0,) * len(shape)
    return pl.BlockSpec(shape, lambda *_: zeros)


def _weight_specs(E):
    shapes = [(E, E), (1, E), (E, LANE), (1, LANE),      # act_scorer
              (E, E), (1, E), (E, E), (1, E),            # unreduce_l
              (E, E), (1, E), (E, E), (1, E)]            # unreduce_r
    return [_full_spec(s) for s in shapes]


@functools.lru_cache(maxsize=None)
def _build_decode_fn(enc_size, n_steps, n_shift, max_depth,
                     use_fixed_actions, buffer_length):
    E = enc_size
    kernel = _make_decode_kernel(n_steps, use_fixed_actions, buffer_length)
    call = pl.pallas_call(
        kernel,
        grid=(),
        out_shape=(jax.ShapeDtypeStruct((n_shift, E), jnp.float32),
                   jax.ShapeDtypeStruct((n_steps, LANE), jnp.float32)),
        in_specs=([pl.BlockSpec(memory_space=pltpu.SMEM),   # action schedule
                   _full_spec((1, E))]                      # input encoding
                  + _weight_specs(E)),
        out_specs=(_full_spec((n_shift, E)), _full_spec((n_steps, LANE))),
        scratch_shapes=[pltpu.VMEM((max_depth, E), jnp.float32),  # enc stack
                        pltpu.SMEM((2,), jnp.int32)],             # [sp, bp]
    )
    return jax.jit(call)


@functools.lru_cache(maxsize=None)
def _build_step_fn(enc_size):
    E = enc_size
    call = pl.pallas_call(
        _fused_step_kernel,
        grid=(),
        out_shape=(jax.ShapeDtypeStruct((1, LANE), jnp.float32),
                   jax.ShapeDtypeStruct((1, E), jnp.float32),
                   jax.ShapeDtypeStruct((1, E), jnp.float32)),
        in_specs=[_full_spec((1, E))] + _weight_specs(E),
        out_specs=(_full_spec((1, LANE)), _full_spec((1, E)), _full_spec((1, E))),
    )
    return jax.jit(call)


# ----------------------------------------------------------------------------
# host-side helpers (action resolution / decoding — pure Python bookkeeping)
# ----------------------------------------------------------------------------
def straight_through(score, x):
    # Forward value == x; gradient would flow to score.  Identity in forward.
    return x * (score - lax.stop_gradient(score) + 1.0)


def decide(act_logits, force=None):
    probs = jax.nn.softmax(act_logits)
    idx = int(force) if force is not None else int(jnp.argmax(act_logits))
    return idx, probs[idx]


def _resolve_actions(fixed_actions, buffer_length):
    """Replay the forcing rules on host; returns (actions, n_shift, max_depth)."""
    actions, sp, bp, max_depth = [], 1, 0, 1
    while True:
        force = None
        if buffer_length is not None:
            if sp == 1 and bp + 1 < buffer_length:
                force = 1
            elif sp + bp == buffer_length:
                force = 0
        if force is None:
            force = int(fixed_actions[len(actions)])   # IndexError mirrors reference
        if force not in (0, 1):
            raise ValueError(f"invalid action {force}")
        actions.append(force)
        if force == 0:
            sp -= 1
            bp += 1
            if sp == 0:
                return actions, bp, max_depth
        else:
            sp += 1
            max_depth = max(max_depth, sp)


def _reconstruct_actions(logits, buffer_length):
    """Rebuild the action record from per-step logits (matches kernel logic)."""
    actions, sp, bp = [], 1, 0
    for t in range(logits.shape[0]):
        if sp == 1 and bp + 1 < buffer_length:
            act = 1
        elif sp + bp == buffer_length:
            act = 0
        else:
            act = 1 if float(logits[t, 1]) > float(logits[t, 0]) else 0
        actions.append(act)
        if act == 0:
            sp -= 1
            bp += 1
        else:
            sp += 1
    return actions


# ----------------------------------------------------------------------------
# Decoder module
# ----------------------------------------------------------------------------
class Decoder:
    def __init__(self, enc_size=256, key=None):
        self.enc_size = int(enc_size)
        E = self.enc_size
        key = jax.random.PRNGKey(0) if key is None else key
        ks = jax.random.split(key, 12)
        s = 1.0 / float(E) ** 0.5

        def lin(kw, kb, din, dout):
            w = jax.random.uniform(kw, (din, dout), jnp.float32, -s, s)
            b = jax.random.uniform(kb, (1, dout), jnp.float32, -s, s)
            return w, b

        # act_scorer: ResLayer(E) -> Linear(E, 2)  (head padded to LANE cols)
        w, b = lin(ks[0], ks[1], E, E)
        self.as_w1, self.as_b1 = w.astype(jnp.bfloat16), b
        w2, b2 = lin(ks[2], ks[3], E, 2)
        self.as_w2 = jnp.zeros((E, LANE), jnp.float32).at[:, :2].set(w2).astype(jnp.bfloat16)
        self.as_b2 = jnp.zeros((1, LANE), jnp.float32).at[:, :2].set(b2)
        # unreduce_l: ResLayer(E) -> ResLayer(E)
        w, b = lin(ks[4], ks[5], E, E)
        self.ul_w1, self.ul_b1 = w.astype(jnp.bfloat16), b
        w, b = lin(ks[6], ks[7], E, E)
        self.ul_w2, self.ul_b2 = w.astype(jnp.bfloat16), b
        # unreduce_r: ResLayer(E) -> ResLayer(E)
        w, b = lin(ks[8], ks[9], E, E)
        self.ur_w1, self.ur_b1 = w.astype(jnp.bfloat16), b
        w, b = lin(ks[10], ks[11], E, E)
        self.ur_w2, self.ur_b2 = w.astype(jnp.bfloat16), b

    def _weights(self):
        return (self.as_w1, self.as_b1, self.as_w2, self.as_b2,
                self.ul_w1, self.ul_b1, self.ul_w2, self.ul_b2,
                self.ur_w1, self.ur_b1, self.ur_w2, self.ur_b2)

    # ------------------------------------------------------------------
    def forward(self, input_encoding, buffer_length=None, fixed_actions=None):
        E = self.enc_size
        x_row = jnp.asarray(input_encoding, jnp.float32).reshape(1, E)

        if fixed_actions is not None:
            # Action sequence fully determined on host -> single on-device kernel.
            actions, n_shift, max_depth = _resolve_actions(fixed_actions, buffer_length)
            fn = _build_decode_fn(E, len(actions), n_shift, max_depth, True, None)
            buf, logits_pad = fn(jnp.asarray(actions, jnp.int32), x_row,
                                 *self._weights())
            return buf, list(actions), logits_pad[:, :2]

        if buffer_length is not None:
            # Forcing rules guarantee exactly 2B-1 steps / B shifts -> one kernel,
            # greedy argmax + forcing computed on device.
            B = int(buffer_length)
            if B < 1:
                raise ValueError("buffer_length must be >= 1")
            n_steps = 2 * B - 1
            fn = _build_decode_fn(E, n_steps, B, B, False, B)
            dummy = jnp.zeros((n_steps,), jnp.int32)
            buf, logits_pad = fn(dummy, x_row, *self._weights())
            logits = logits_pad[:, :2]
            actions = _reconstruct_actions(jax.device_get(logits), B)
            return buf, actions, logits

        # Fully greedy decoding: termination / output length is data-dependent,
        # so the loop stays on host but uses a single fused per-step kernel.
        return self._forward_host_loop(x_row)

    # ------------------------------------------------------------------
    def _forward_host_loop(self, x_row):
        # TODO(synk): dynamic-length greedy decode needs a host loop (output
        # shape is data-dependent); each step is one fused pallas_call.
        step_fn = _build_step_fn(self.enc_size)
        enc_stack = [x_row[0]]
        buffer_slices, action_record, logit_record = [], [], []
        while True:
            logits_pad, l_row, r_row = step_fn(enc_stack[-1][None, :],
                                               *self._weights())
            act_logits = logits_pad[0, :2]
            act_idx, act_score = decide(act_logits, force=None)
            action_record.append(act_idx)
            logit_record.append(act_logits)
            if act_idx == 0:
                unshifted = enc_stack.pop()
                buffer_slices.append(straight_through(act_score, unshifted))
                if len(enc_stack) == 0:
                    return (jnp.stack(buffer_slices, 0), action_record,
                            jnp.stack(logit_record, 0))
            else:
                enc_stack.pop()
                enc_stack.append(straight_through(act_score, r_row[0]))
                enc_stack.append(straight_through(act_score, l_row[0]))


# ----------------------------------------------------------------------------
# pure-JAX reference (mirrors the kernel math, incl. bf16 MXU operands)
# ----------------------------------------------------------------------------
def _reference_forward_fixed(dec, x_row, actions):
    def res(v, w, b):
        h = jnp.dot(v.astype(jnp.bfloat16), w,
                    preferred_element_type=jnp.float32) + b
        return v + jnp.maximum(h, 0.0)

    stack, buf, logs = [x_row], [], []
    for a in actions:
        top = stack[-1]
        h = res(top, dec.as_w1, dec.as_b1)
        lg = jnp.dot(h.astype(jnp.bfloat16), dec.as_w2,
                     preferred_element_type=jnp.float32) + dec.as_b2
        logs.append(lg[0, :2])
        if a == 0:
            buf.append(stack.pop()[0])
        else:
            p = stack.pop()
            l = res(res(p, dec.ul_w1, dec.ul_b1), dec.ul_w2, dec.ul_b2)
            r = res(res(p, dec.ur_w1, dec.ur_b1), dec.ur_w2, dec.ur_b2)
            stack.append(r)
            stack.append(l)
    return jnp.stack(buf, 0), jnp.stack(logs, 0)


# ----------------------------------------------------------------------------
if __name__ == "__main__":
    ENC_SIZE = 256
    key = jax.random.PRNGKey(0)
    k_params, k_input = jax.random.split(key)

    decoder = Decoder(enc_size=ENC_SIZE, key=k_params)
    input_encoding = jax.random.normal(k_input, (ENC_SIZE,), jnp.float32)

    # Fixed action sequence: reduce, shift, reduce, shift, shift -> 3 buffer slices
    fixed_actions = [1, 0, 1, 0, 0]

    buffer_out, actions, logits_out = decoder.forward(
        input_encoding, fixed_actions=fixed_actions)
    jax.block_until_ready(buffer_out)
    jax.block_until_ready(logits_out)

    assert buffer_out.shape == (3, ENC_SIZE)
    assert logits_out.shape == (len(fixed_actions), 2)
    assert actions == fixed_actions
    assert bool(jnp.all(jnp.isfinite(buffer_out)))
    assert bool(jnp.all(jnp.isfinite(logits_out)))

    # numerical check against a pure-JAX reference of the same forward pass
    ref_buf, ref_logits = _reference_forward_fixed(
        decoder, input_encoding[None, :], fixed_actions)
    assert jnp.allclose(buffer_out, ref_buf, rtol=1e-3, atol=1e-3)
    assert jnp.allclose(logits_out, ref_logits, rtol=1e-3, atol=1e-3)

    print("KERNEL_OK")
</pallas_src>

<mosaic_0001>
module attributes {stable_mosaic.version = 11 : i64} {
  func.func @kernel(%arg0: memref<5xi32, #tpu.memory_space<smem>>, %arg1: memref<1x256xf32, #tpu.memory_space<vmem>>, %arg2: memref<256x256xbf16, #tpu.memory_space<vmem>>, %arg3: memref<1x256xf32, #tpu.memory_space<vmem>>, %arg4: memref<256x128xbf16, #tpu.memory_space<vmem>>, %arg5: memref<1x128xf32, #tpu.memory_space<vmem>>, %arg6: memref<256x256xbf16, #tpu.memory_space<vmem>>, %arg7: memref<1x256xf32, #tpu.memory_space<vmem>>, %arg8: memref<256x256xbf16, #tpu.memory_space<vmem>>, %arg9: memref<1x256xf32, #tpu.memory_space<vmem>>, %arg10: memref<256x256xbf16, #tpu.memory_space<vmem>>, %arg11: memref<1x256xf32, #tpu.memory_space<vmem>>, %arg12: memref<256x256xbf16, #tpu.memory_space<vmem>>, %arg13: memref<1x256xf32, #tpu.memory_space<vmem>>, %arg14: memref<3x256xf32, #tpu.memory_space<vmem>>, %arg15: memref<5x128xf32, #tpu.memory_space<vmem>>, %arg16: memref<2x256xf32, #tpu.memory_space<vmem>>, %arg17: memref<2xi32, #tpu.memory_space<smem>>) attributes {dimension_semantics = [], scalar_prefetch = 0 : i64, scratch_operands = 2 : i64, tpu.core_type = #tpu.core_type<tc>} {
    %c0 = arith.constant 0 : index
    %c0_0 = arith.constant 0 : index
    %0 = vector.load %arg1[%c0, %c0_0] : memref<1x256xf32, #tpu.memory_space<vmem>>, vector<1x256xf32>
    %c0_1 = arith.constant 0 : index
    %c0_2 = arith.constant 0 : index
    %1 = vector.load %arg16[%c0_1, %c0_2] : memref<2x256xf32, #tpu.memory_space<vmem>>, vector<1x256xf32>
    tpu.vector_store %arg16[%c0_1, %c0_2], %0 {strides = array<i32>} : memref<2x256xf32, #tpu.memory_space<vmem>>, vector<1x256xf32>,
    %c1_i32 = arith.constant 1 : i32
    %c0_3 = arith.constant 0 : index
    %2 = memref.load %arg17[%c0_3] : memref<2xi32, #tpu.memory_space<smem>>
    memref.store %c1_i32, %arg17[%c0_3] : memref<2xi32, #tpu.memory_space<smem>>
    %c0_i32 = arith.constant 0 : i32
    %c1 = arith.constant 1 : index
    %3 = memref.load %arg17[%c1] : memref<2xi32, #tpu.memory_space<smem>>
    memref.store %c0_i32, %arg17[%c1] : memref<2xi32, #tpu.memory_space<smem>>
    %c0_i32_4 = arith.constant 0 : i32
    %c5_i32 = arith.constant 5 : i32
    %4 = arith.addi %c0_i32_4, %c5_i32 : i32
    %c1_i32_5 = arith.constant 1 : i32
    scf.for %arg18 = %c0_i32_4 to %4 step %c1_i32_5  : i32 {
      %c0_7 = arith.constant 0 : index
      %5 = memref.load %arg17[%c0_7] : memref<2xi32, #tpu.memory_space<smem>>
      %c1_8 = arith.constant 1 : index
      %6 = memref.load %arg17[%c1_8] : memref<2xi32, #tpu.memory_space<smem>>
      %c1_i32_9 = arith.constant 1 : i32
      %7 = arith.subi %5, %c1_i32_9 : i32
      %8 = arith.index_cast %7 : i32 to index
      %c0_10 = arith.constant 0 : index
      %9 = vector.load %arg16[%8, %c0_10] : memref<2x256xf32, #tpu.memory_space<vmem>>, vector<1x256xf32>
      %10 = arith.truncf %9 : vector<1x256xf32> to vector<1x256xbf16>
      %c0_11 = arith.constant 0 : index
      %c0_12 = arith.constant 0 : index
      %11 = vector.load %arg2[%c0_11, %c0_12] : memref<256x256xbf16, #tpu.memory_space<vmem>>, vector<256x256xbf16>
      %cst = arith.constant dense<0.000000e+00> : vector<1x256xf32>
      %12 = tpu.matmul %10, %11, %cst {dimension_numbers = #tpu.dot_dimension_numbers<[1], [0], [0], [1], [0, 0, 1, 1], [], []>} : vector<1x256xbf16>, vector<256x256xbf16>, vector<1x256xf32> -> vector<1x256xf32>
      %c0_13 = arith.constant 0 : index
      %c0_14 = arith.constant 0 : index
      %13 = vector.load %arg3[%c0_13, %c0_14] : memref<1x256xf32, #tpu.memory_space<vmem>>, vector<1x256xf32>
      %14 = arith.addf %12, %13 : vector<1x256xf32>
      %cst_15 = arith.constant 0.000000e+00 : f32
      %15 = vector.broadcast %cst_15 : f32 to vector<1x256xf32>
      %16 = arith.maximumf %14, %15 : vector<1x256xf32>
      %17 = arith.addf %9, %16 : vector<1x256xf32>
      %18 = arith.truncf %17 : vector<1x256xf32> to vector<1x256xbf16>
      %c0_16 = arith.constant 0 : index
      %c0_17 = arith.constant 0 : index
      %19 = vector.load %arg4[%c0_16, %c0_17] : memref<256x128xbf16, #tpu.memory_space<vmem>>, vector<256x128xbf16>
      %cst_18 = arith.constant dense<0.000000e+00> : vector<1x128xf32>
      %20 = tpu.matmul %18, %19, %cst_18 {dimension_numbers = #tpu.dot_dimension_numbers<[1], [0], [0], [1], [0, 0, 1, 1], [], []>} : vector<1x256xbf16>, vector<256x128xbf16>, vector<1x128xf32> -> vector<1x128xf32>
      %c0_19 = arith.constant 0 : index
      %c0_20 = arith.constant 0 : index
      %21 = vector.load %arg5[%c0_19, %c0_20] : memref<1x128xf32, #tpu.memory_space<vmem>>, vector<1x128xf32>
      %22 = arith.addf %20, %21 : vector<1x128xf32>
      %23 = arith.index_cast %arg18 : i32 to index
      %c0_21 = arith.constant 0 : index
      %24 = vector.load %arg15[%23, %c0_21] : memref<5x128xf32, #tpu.memory_space<vmem>>, vector<1x128xf32>
      tpu.vector_store %arg15[%23, %c0_21], %22 {strides = array<i32>} : memref<5x128xf32, #tpu.memory_space<vmem>>, vector<1x128xf32>,
      %25 = arith.index_cast %arg18 : i32 to index
      %26 = memref.load %arg0[%25] : memref<5xi32, #tpu.memory_space<smem>>
      %c0_i32_22 = arith.constant 0 : i32
      %27 = arith.cmpi eq, %26, %c0_i32_22 : i32
      %28 = arith.extui %27 : i1 to i32
      %c0_i32_23 = arith.constant 0 : i32
      %29 = arith.cmpi ne, %28, %c0_i32_23 : i32
      scf.if %29 {
        %33 = arith.index_cast %6 : i32 to index
        %c0_26 = arith.constant 0 : index
        %34 = vector.load %arg14[%33, %c0_26] : memref<3x256xf32, #tpu.memory_space<vmem>>, vector<1x256xf32>
        tpu.vector_store %arg14[%33, %c0_26], %9 {strides = array<i32>} : memref<3x256xf32, #tpu.memory_space<vmem>>, vector<1x256xf32>,
        %c1_i32_27 = arith.constant 1 : i32
        %35 = arith.subi %5, %c1_i32_27 : i32
        %c0_28 = arith.constant 0 : index
        %36 = memref.load %arg17[%c0_28] : memref<2xi32, #tpu.memory_space<smem>>
        memref.store %35, %arg17[%c0_28] : memref<2xi32, #tpu.memory_space<smem>>
        %c1_i32_29 = arith.constant 1 : i32
        %37 = arith.addi %6, %c1_i32_29 : i32
        %c1_30 = arith.constant 1 : index
        %38 = memref.load %arg17[%c1_30] : memref<2xi32, #tpu.memory_space<smem>>
        memref.store %37, %arg17[%c1_30] : memref<2xi32, #tpu.memory_space<smem>>
      } else {
      }
      %c1_i32_24 = arith.constant 1 : i32
      %30 = arith.cmpi eq, %26, %c1_i32_24 : i32
      %31 = arith.extui %30 : i1 to i32
      %c0_i32_25 = arith.constant 0 : i32
      %32 = arith.cmpi ne, %31, %c0_i32_25 : i32
      scf.if %32 {
        %33 = arith.truncf %9 : vector<1x256xf32> to vector<1x256xbf16>
        %c0_26 = arith.constant 0 : index
        %c0_27 = arith.constant 0 : index
        %34 = vector.load %arg6[%c0_26, %c0_27] : memref<256x256xbf16, #tpu.memory_space<vmem>>, vector<256x256xbf16>
        %cst_28 = arith.constant dense<0.000000e+00> : vector<1x256xf32>
        %35 = tpu.matmul %33, %34, %cst_28 {dimension_numbers = #tpu.dot_dimension_numbers<[1], [0], [0], [1], [0, 0, 1, 1], [], []>} : vector<1x256xbf16>, vector<256x256xbf16>, vector<1x256xf32> -> vector<1x256xf32>
        %c0_29 = arith.constant 0 : index
        %c0_30 = arith.constant 0 : index
        %36 = vector.load %arg7[%c0_29, %c0_30] : memref<1x256xf32, #tpu.memory_space<vmem>>, vector<1x256xf32>
        %37 = arith.addf %35, %36 : vector<1x256xf32>
        %cst_31 = arith.constant 0.000000e+00 : f32
        %38 = vector.broadcast %cst_31 : f32 to vector<1x256xf32>
        %39 = arith.maximumf %37, %38 : vector<1x256xf32>
        %40 = arith.addf %9, %39 : vector<1x256xf32>
        %41 = arith.truncf %40 : vector<1x256xf32> to vector<1x256xbf16>
        %c0_32 = arith.constant 0 : index
        %c0_33 = arith.constant 0 : index
        %42 = vector.load %arg8[%c0_32, %c0_33] : memref<256x256xbf16, #tpu.memory_space<vmem>>, vector<256x256xbf16>
        %cst_34 = arith.constant dense<0.000000e+00> : vector<1x256xf32>
        %43 = tpu.matmul %41, %42, %cst_34 {dimension_numbers = #tpu.dot_dimension_numbers<[1], [0], [0], [1], [0, 0, 1, 1], [], []>} : vector<1x256xbf16>, vector<256x256xbf16>, vector<1x256xf32> -> vector<1x256xf32>
        %c0_35 = arith.constant 0 : index
        %c0_36 = arith.constant 0 : index
        %44 = vector.load %arg9[%c0_35, %c0_36] : memref<1x256xf32, #tpu.memory_space<vmem>>, vector<1x256xf32>
        %45 = arith.addf %43, %44 : vector<1x256xf32>
        %cst_37 = arith.constant 0.000000e+00 : f32
        %46 = vector.broadcast %cst_37 : f32 to vector<1x256xf32>
        %47 = arith.maximumf %45, %46 : vector<1x256xf32>
        %48 = arith.addf %40, %47 : vector<1x256xf32>
        %49 = arith.truncf %9 : vector<1x256xf32> to vector<1x256xbf16>
        %c0_38 = arith.constant 0 : index
        %c0_39 = arith.constant 0 : index
        %50 = vector.load %arg10[%c0_38, %c0_39] : memref<256x256xbf16, #tpu.memory_space<vmem>>, vector<256x256xbf16>
        %cst_40 = arith.constant dense<0.000000e+00> : vector<1x256xf32>
        %51 = tpu.matmul %49, %50, %cst_40 {dimension_numbers = #tpu.dot_dimension_numbers<[1], [0], [0], [1], [0, 0, 1, 1], [], []>} : vector<1x256xbf16>, vector<256x256xbf16>, vector<1x256xf32> -> vector<1x256xf32>
        %c0_41 = arith.constant 0 : index
        %c0_42 = arith.constant 0 : index
        %52 = vector.load %arg11[%c0_41, %c0_42] : memref<1x256xf32, #tpu.memory_space<vmem>>, vector<1x256xf32>
        %53 = arith.addf %51, %52 : vector<1x256xf32>
        %cst_43 = arith.constant 0.000000e+00 : f32
        %54 = vector.broadcast %cst_43 : f32 to vector<1x256xf32>
        %55 = arith.maximumf %53, %54 : vector<1x256xf32>
        %56 = arith.addf %9, %55 : vector<1x256xf32>
        %57 = arith.truncf %56 : vector<1x256xf32> to vector<1x256xbf16>
        %c0_44 = arith.constant 0 : index
        %c0_45 = arith.constant 0 : index
        %58 = vector.load %arg12[%c0_44, %c0_45] : memref<256x256xbf16, #tpu.memory_space<vmem>>, vector<256x256xbf16>
        %cst_46 = arith.constant dense<0.000000e+00> : vector<1x256xf32>
        %59 = tpu.matmul %57, %58, %cst_46 {dimension_numbers = #tpu.dot_dimension_numbers<[1], [0], [0], [1], [0, 0, 1, 1], [], []>} : vector<1x256xbf16>, vector<256x256xbf16>, vector<1x256xf32> -> vector<1x256xf32>
        %c0_47 = arith.constant 0 : index
        %c0_48 = arith.constant 0 : index
        %60 = vector.load %arg13[%c0_47, %c0_48] : memref<1x256xf32, #tpu.memory_space<vmem>>, vector<1x256xf32>
        %61 = arith.addf %59, %60 : vector<1x256xf32>
        %cst_49 = arith.constant 0.000000e+00 : f32
        %62 = vector.broadcast %cst_49 : f32 to vector<1x256xf32>
        %63 = arith.maximumf %61, %62 : vector<1x256xf32>
        %64 = arith.addf %56, %63 : vector<1x256xf32>
        %c1_i32_50 = arith.constant 1 : i32
        %65 = arith.subi %5, %c1_i32_50 : i32
        %66 = arith.index_cast %65 : i32 to index
        %c0_51 = arith.constant 0 : index
        %67 = vector.load %arg16[%66, %c0_51] : memref<2x256xf32, #tpu.memory_space<vmem>>, vector<1x256xf32>
        tpu.vector_store %arg16[%66, %c0_51], %64 {strides = array<i32>} : memref<2x256xf32, #tpu.memory_space<vmem>>, vector<1x256xf32>,
        %68 = arith.index_cast %5 : i32 to index
        %c0_52 = arith.constant 0 : index
        %69 = vector.load %arg16[%68, %c0_52] : memref<2x256xf32, #tpu.memory_space<vmem>>, vector<1x256xf32>
        tpu.vector_store %arg16[%68, %c0_52], %48 {strides = array<i32>} : memref<2x256xf32, #tpu.memory_space<vmem>>, vector<1x256xf32>,
        %c1_i32_53 = arith.constant 1 : i32
        %70 = arith.addi %5, %c1_i32_53 : i32
        %c0_54 = arith.constant 0 : index
        %71 = memref.load %arg17[%c0_54] : memref<2xi32, #tpu.memory_space<smem>>
        memref.store %70, %arg17[%c0_54] : memref<2xi32, #tpu.memory_space<smem>>
      } else {
      }
    }
    %c5_i32_6 = arith.constant 5 : i32
    return
  }
}

</mosaic_0001>

<bundles_post_ra>
// kernel: tpu_custom_call.1
= control target key start
LH: loop header
LB: loop body
LE: loop exit
PB: predicated region body
PF: predicated region fallthrough
CT: control target
= control target key end

     0   :  { %21 = vsyncpa [#allocation7], 0  ;;  %s2855_s0 = inlined_call_operand.hbm [shape: s32[5], index: 0, kind: input, shape index: {}]   ;;  %s2856_s1 = inlined_call_operand.vmem [shape: f32[1,256], index: 1, kind: input, shape index: {}]   ;;  %s2857_s2 = inlined_call_operand.hbm [shape: bf16[256,256], index: 2, kind: input, shape index: {}]   ;;  %s2858_s3 = inlined_call_operand.vmem [shape: f32[1,256], index: 3, kind: input, shape index: {}]   ;;  %s2859_s4 = inlined_call_operand.hbm [shape: bf16[256,128], index: 4, kind: input, shape index: {}]   ;;  %s2860_s5 = inlined_call_operand.vmem [shape: f32[1,128], index: 5, kind: input, shape index: {}]   ;;  %s2861_s6 = inlined_call_operand.hbm [shape: bf16[256,256], index: 6, kind: input, shape index: {}]   ;;  %s2862_s7 = inlined_call_operand.vmem [shape: f32[1,256], index: 7, kind: input, shape index: {}]   ;;  %s2863_s8 = inlined_call_operand.hbm [shape: bf16[256,256], index: 8, kind: input, shape index: {}]   ;;  %s2864_s9 = inlined_call_operand.vmem [shape: f32[1,256], index: 9, kind: input, shape index: {}]   ;;  %s2865_s10 = inlined_call_operand.hbm [shape: bf16[256,256], index: 10, kind: input, shape index: {}]   ;;  %s2866_s11 = inlined_call_operand.vmem [shape: f32[1,256], index: 11, kind: input, shape index: {}]   ;;  %s2867_s12 = inlined_call_operand.hbm [shape: bf16[256,256], index: 12, kind: input, shape index: {}]   ;;  %s2868_s13 = inlined_call_operand.vmem [shape: f32[1,256], index: 13, kind: input, shape index: {}]   ;;  %s2869_s14 = inlined_call_operand.hbm [shape: f32[3,256], index: 14, kind: output, shape index: {0}]   ;;  %s2870_s15 = inlined_call_operand.hbm [shape: f32[5,128], index: 15, kind: output, shape index: {1}]  }
   0x1   :  { %22 = vsyncpa [#allocation5], 0 }
   0x2   :  { %23 = vsyncpa [#allocation10], 0 }
   0x3   :  { %24 = vsyncpa [#allocation13], 0 }
   0x4   :  { %25 = vsyncpa [#allocation16], 0 }
   0x5   :  { %26 = vsyncpa [#allocation6], 0 }
   0x6   :  { %27 = vsyncpa [#allocation19], 0  ;;  %s2506_s18 = smov [#allocation9]   ;;  %s2298_s22 = scalar_lea.hbm %s2859_s4, 2048 }
   0x7   :  { %s57_s19 = sshll.u32 %s2506_s18, 4  ;;  %p2299_p0 = scmp.ne.s32.totalorder %s2859_s4, %s2298_s22  ;;  %s58_s19 = int_to_ptr.vmem [resolvable:$true] %s57_s19 }
   0x8   :  { %p2302_p1 = scmp.lt.u32.totalorder %s2298_s22, %s2859_s4 }
   0xa   :  { %p2304_p2 = pnand %p2302_p1, %p2299_p0 }
   0xc   :  { %2307 = shalt.err (!%p2304_p2)
}
   0xd   :  { %s2308_s27 = scalar_lea.vmem %s58_s19, 2048  ;;  %p2313_p4 = scmp.lt.s32.totalorder %s58_s19, %s58_s19 }
   0xe   :  { %p2309_p3 = scmp.ne.s32.totalorder %s58_s19, %s2308_s27  ;;  %p2314_p5 = scmp.lt.s32.totalorder %s2308_s27, %s2308_s27 }
  0x10   :  { %p2315_p6 = por %p2314_p5, %p2313_p4 }
  0x12   :  { %p2316_p7 = pnand %p2315_p6, %p2309_p3 }
  0x14   :  { %2319 = shalt.err (!%p2316_p7)
}
  0x15   :  { %s2507_s28 = smov 64   ;;  %s2508_s29 = smov 4  }
  0x16   :  { %63 = dma.hbm_to_vmem [thread:$0]  %s2859_s4, 2048, %s58_s19, [#allocation10], %s2507_s28, %s2507_s28, %s2508_s29  }
  0x17   :  { %s2509_s17 = smov [#allocation12]   ;;  %s2320_s22 = scalar_lea.hbm %s2863_s8, 4096 }
  0x18   :  { %s85_s18 = sshll.u32 %s2509_s17, 4  ;;  %p2321_p8 = scmp.ne.s32.totalorder %s2863_s8, %s2320_s22  ;;  %s86_s18 = int_to_ptr.vmem [resolvable:$true] %s85_s18 }
  0x19   :  { %p2324_p9 = scmp.lt.u32.totalorder %s2320_s22, %s2863_s8 }
  0x1b   :  { %p2326_p10 = pnand %p2324_p9, %p2321_p8 }
  0x1d   :  { %2329 = shalt.err (!%p2326_p10)
}
  0x1e   :  { %s2330_s27 = scalar_lea.vmem %s86_s18, 4096  ;;  %p2335_p12 = scmp.lt.s32.totalorder %s86_s18, %s86_s18 }
  0x1f   :  { %p2331_p11 = scmp.ne.s32.totalorder %s86_s18, %s2330_s27  ;;  %p2336_p13 = scmp.lt.s32.totalorder %s2330_s27, %s2330_s27 }
  0x21   :  { %p2337_p0 = por %p2336_p13, %p2335_p12 }
  0x23   :  { %p2338_p1 = pnand %p2337_p0, %p2331_p11 }
  0x25   :  { %2341 = shalt.err (!%p2338_p1)
}
  0x26   :  { %s2510_s4 = smov 128   ;;  %s2511_s19 = smov 8  }
  0x27   :  { %91 = dma.hbm_to_vmem [thread:$0]  %s2863_s8, 4096, %s86_s18, [#allocation13], %s2510_s4, %s2510_s4, %s2511_s19  }
  0x28   :  { %s2342_s17 = scalar_lea.hbm %s2855_s0, 16 }
  0x29   :  { %p2343_p2 = scmp.ne.s32.totalorder %s2855_s0, %s2342_s17  ;;  %p2346_p3 = scmp.lt.u32.totalorder %s2342_s17, %s2855_s0 }
  0x2b   :  { %p2348_p4 = pnand %p2346_p3, %p2343_p2 }
  0x2d   :  { %2351 = shalt.err (!%p2348_p4)
}
  0x2e   :  { %s2512_s24 = smov [#allocation4]   ;;  %s2513_s8 = smov [#allocation8]  }
  0x2f   :  { %35 = dma.hbm_to_smem %s2855_s0, 16, %s2512_s24, [#allocation7]  }
  0x30   :  { %s43_s18 = sshll.u32 %s2513_s8, 4  ;;  %s2514_s27 = smov [#allocation11]   ;;  %s44_s18 = int_to_ptr.vmem [resolvable:$true] %s43_s18 }
  0x31   :  { %s71_s28 = sshll.u32 %s2514_s27, 4  ;;  %s2352_s16 = scalar_lea.hbm %s2857_s2, 4096  ;;  %s72_s28 = int_to_ptr.vmem [resolvable:$true] %s71_s28 }
  0x32   :  { %p2353_p5 = scmp.ne.s32.totalorder %s2857_s2, %s2352_s16  ;;  %p2356_p6 = scmp.lt.u32.totalorder %s2352_s16, %s2857_s2 }
  0x34   :  { %p2358_p7 = pnand %p2356_p6, %p2353_p5 }
  0x36   :  { %2361 = shalt.err (!%p2358_p7)
}
  0x37   :  { %s2362_s0 = scalar_lea.vmem %s44_s18, 4096  ;;  %p2367_p9 = scmp.lt.s32.totalorder %s44_s18, %s44_s18 }
  0x38   :  { %p2363_p8 = scmp.ne.s32.totalorder %s44_s18, %s2362_s0  ;;  %p2368_p10 = scmp.lt.s32.totalorder %s2362_s0, %s2362_s0 }
  0x3a   :  { %p2369_p11 = por %p2368_p10, %p2367_p9 }
  0x3c   :  { %p2370_p12 = pnand %p2369_p11, %p2363_p8 }
  0x3e   :  { %2373 = shalt.err (!%p2370_p12)
}
  0x3f   :  { %49 = dma.hbm_to_vmem [thread:$0]  %s2857_s2, 4096, %s44_s18, [#allocation5], %s2510_s4, %s2510_s4, %s2511_s19  }
  0x40   :  { %s2374_s8 = scalar_lea.hbm %s2861_s6, 4096 }
  0x41   :  { %p2375_p13 = scmp.ne.s32.totalorder %s2861_s6, %s2374_s8  ;;  %p2378_p0 = scmp.lt.u32.totalorder %s2374_s8, %s2861_s6 }
  0x43   :  { %p2380_p1 = pnand %p2378_p0, %p2375_p13 }
  0x45   :  { %2383 = shalt.err (!%p2380_p1)
}
  0x46   :  { %s2384_s20 = scalar_lea.vmem %s72_s28, 4096  ;;  %p2389_p3 = scmp.lt.s32.totalorder %s72_s28, %s72_s28 }
  0x47   :  { %p2385_p2 = scmp.ne.s32.totalorder %s72_s28, %s2384_s20  ;;  %p2390_p4 = scmp.lt.s32.totalorder %s2384_s20, %s2384_s20 }
  0x49   :  { %p2391_p5 = por %p2390_p4, %p2389_p3 }
  0x4b   :  { %p2392_p6 = pnand %p2391_p5, %p2385_p2 }
  0x4d   :  { %2395 = shalt.err (!%p2392_p6)
}
  0x4e   :  { %77 = dma.hbm_to_vmem [thread:$0]  %s2861_s6, 4096, %s72_s28, [#allocation10], %s2510_s4, %s2510_s4, %s2511_s19  }
  0x4f   :  { %s2515_s21 = smov [#allocation14]   ;;  %s2516_s22 = smov [#allocation15]  }
  0x50   :  { %s99_s17 = sshll.u32 %s2515_s21, 4  ;;  %s113_s0 = sshll.u32 %s2516_s22, 4  ;;  %s100_s17 = int_to_ptr.vmem [resolvable:$true] %s99_s17  ;;  %s114_s0 = int_to_ptr.vmem [resolvable:$true] %s113_s0 }
  0x51   :  { %s2396_s25 = scalar_lea.hbm %s2865_s10, 4096 }
  0x52   :  { %p2397_p7 = scmp.ne.s32.totalorder %s2865_s10, %s2396_s25  ;;  %p2400_p8 = scmp.lt.u32.totalorder %s2396_s25, %s2865_s10 }
  0x54   :  { %p2402_p9 = pnand %p2400_p8, %p2397_p7 }
  0x56   :  { %2405 = shalt.err (!%p2402_p9)
}
  0x57   :  { %s2406_s6 = scalar_lea.vmem %s100_s17, 4096  ;;  %p2411_p11 = scmp.lt.s32.totalorder %s100_s17, %s100_s17 }
  0x58   :  { %p2407_p10 = scmp.ne.s32.totalorder %s100_s17, %s2406_s6  ;;  %p2412_p12 = scmp.lt.s32.totalorder %s2406_s6, %s2406_s6 }
  0x5a   :  { %p2413_p13 = por %p2412_p12, %p2411_p11 }
  0x5c   :  { %p2414_p0 = pnand %p2413_p13, %p2407_p10 }
  0x5e   :  { %2417 = shalt.err (!%p2414_p0)
}
  0x5f   :  { %105 = dma.hbm_to_vmem [thread:$0]  %s2865_s10, 4096, %s100_s17, [#allocation13], %s2510_s4, %s2510_s4, %s2511_s19  }
  0x60   :  { %s2418_s2 = scalar_lea.hbm %s2867_s12, 4096 }
  0x61   :  { %p2419_p1 = scmp.ne.s32.totalorder %s2867_s12, %s2418_s2  ;;  %p2422_p2 = scmp.lt.u32.totalorder %s2418_s2, %s2867_s12 }
  0x63   :  { %p2424_p3 = pnand %p2422_p2, %p2419_p1 }
  0x65   :  { %2427 = shalt.err (!%p2424_p3)
}
  0x66   :  { %s2428_s24 = scalar_lea.vmem %s114_s0, 4096  ;;  %p2433_p5 = scmp.lt.s32.totalorder %s114_s0, %s114_s0 }
  0x67   :  { %p2429_p4 = scmp.ne.s32.totalorder %s114_s0, %s2428_s24  ;;  %p2434_p6 = scmp.lt.s32.totalorder %s2428_s24, %s2428_s24 }
  0x69   :  { %p2435_p7 = por %p2434_p6, %p2433_p5 }
  0x6b   :  { %p2436_p8 = pnand %p2435_p7, %p2429_p4 }
  0x6d   :  { %2439 = shalt.err (!%p2436_p8)
}
  0x6e   :  { %119 = dma.hbm_to_vmem [thread:$0]  %s2867_s12, 4096, %s114_s0, [#allocation16], %s2510_s4, %s2510_s4, %s2511_s19  }
  0x6f   :  { %2488 = dma.done.wait [#allocation7], 16  }
  0x70   :  { %2489 = vsyncadd [#allocation7], 4294967280 }
  0x71   :  { %2490 = dma.done.wait [#allocation5], 4096  }
  0x72   :  { %2491 = vsyncadd [#allocation5], 4294963200 }
  0x73   :  { %2492 = dma.done.wait [#allocation10], 6144  }
  0x74   :  { %2493 = vsyncadd [#allocation10], 4294961152 }
  0x75   :  { %2494 = dma.done.wait [#allocation13], 8192  }
  0x76   :  { %2495 = vsyncadd [#allocation13], 4294959104 }
  0x77   :  { %2496 = dma.done.wait [#allocation16], 4096  }
  0x78   :  { %2497 = vsyncadd [#allocation16], 4294963200 }
  0x79   :  { %143 = sfence }
  0x7a   :  { %v145_v0 = vld [vmem:[%s2856_s1] sm:$0x3]  ;;  %v146_v1 = vlaneseq  ;;  %s2517_s8 = smov 1   ;;  %s2518_s12 = smov 0  }
  0x7b   :  { %152 = sst [smem:[#allocation3]] %s2517_s8  ;;  %s2711_s4 = smov 0  }
  0x7c   :  { %vm2705_vm0 = vcmp.lt.s32.totalorder %v146_v1, 256  ;;  %154 = sst [smem:[#allocation3 + $0x1]] %s2518_s12 }
  0x7d   :  { %150 = vst.msk [vmem:[#allocation2] ss:$2 sm:$0x3] %vm2705_vm0, %v145_v0 }
  0x7e LB: > { %s2716_s1 = sld [smem:[#allocation3 + $0x1]]  ;;  %v2042_v3 = vld [vmem:[#allocation8 + $0x4] ss:$8 sps:$4 sm:$0xff]   ;;  %v2044_v4 = vld [vmem:[#allocation8] ss:$8 sps:$4 sm:$0xff]   ;;  %s2718_s19 = sld [smem:[#allocation3]]  ;;  %s2504_s4 = sphi %s2711_s4, %s160_s4  }
  0x7f   : > { %390 = vmatprep.subr.bf16.mxu0 %v2042_v3  ;;  %v2045_v5 = vld [vmem:[#allocation8 + $0x14] ss:$8 sps:$4 sm:$0xff]   ;;  %v2047_v6 = vld [vmem:[#allocation8 + $0x10] ss:$8 sps:$4 sm:$0xff]   ;;  %v2048_v7 = vld [vmem:[#allocation8 + $0x24] ss:$8 sps:$4 sm:$0xff]  }
  0x80   : > { %391 = vmatpush1.bf16.msra.mxu0 %v2044_v4  ;;  %v2050_v8 = vld [vmem:[#allocation8 + $0x20] ss:$8 sps:$4 sm:$0xff]   ;;  %v2051_v9 = vld [vmem:[#allocation8 + $0x34] ss:$8 sps:$4 sm:$0xff]   ;;  %v2053_v10 = vld [vmem:[#allocation8 + $0x30] ss:$8 sps:$4 sm:$0xff]  }
  0x81   : > { %392 = vmatprep.subr.bf16.mxu0 %v2045_v5  ;;  %v2054_v11 = vld [vmem:[#allocation8 + $0x44] ss:$8 sps:$4 sm:$0xff]   ;;  %v2726_v12 = vshrl.u32 %v146_v1, 7  ;;  %v2056_v13 = vld [vmem:[#allocation8 + $0x40] ss:$8 sps:$4 sm:$0xff]   ;;  %v2094_v28 = vld [vmem:[#allocation9 + $0x50] sm:$0xff]  }
  0x82   : > { %v2057_v14 = vld [vmem:[#allocation8 + $0x54] ss:$8 sps:$4 sm:$0xff]   ;;  %v2059_v16 = vld [vmem:[#allocation8 + $0x50] ss:$8 sps:$4 sm:$0xff]   ;;  %v2060_v17 = vld [vmem:[#allocation8 + $0x64] ss:$8 sps:$4 sm:$0xff]  }
  0x83   : > { %v2731_v15 = vsub.s32 1, %v2726_v12  ;;  %v2062_v18 = vld [vmem:[#allocation8 + $0x60] ss:$8 sps:$4 sm:$0xff]   ;;  %v2063_v21 = vld [vmem:[#allocation8 + $0x74] ss:$8 sps:$4 sm:$0xff]   ;;  %v2744_v44 = vsub.s32 0, %v2726_v12 }
  0x84   : > { %393 = vmatpush1.bf16.msra.mxu0 %v2047_v6  ;;  %s2721_s0 = sadd.s32 4294967295, %s2718_s19  ;;  %v2090_v20 = vld [vmem:[#allocation9 + $0x40] sm:$0xff]   ;;  %v2092_v25 = vld [vmem:[#allocation9 + $0x48] sm:$0xff]   ;;  %v2065_v26 = vld [vmem:[#allocation8 + $0x70] ss:$8 sps:$4 sm:$0xff]   ;;  %s636_s2 = sld [smem:[#allocation4 + %s2504_s4]] }
  0x85   : > { %394 = vmatprep.subr.bf16.mxu0 %v2048_v7  ;;  %s164_s27 = sshra.s32 %s2721_s0, 1  ;;  %s167_s29 = sand.u32 1, %s2721_s0  ;;  %1996 = vmatprep.subr.bf16.mxu1 %v2090_v20  ;;  %v2091_v23 = vld [vmem:[#allocation9] sm:$0xff]   ;;  %v2093_v27 = vld [vmem:[#allocation9 + $0x8] sm:$0xff]   ;;  %v2095_v30 = vld [vmem:[#allocation9 + $0x10] sm:$0xff]  }
  0x86   : > { %s1993_s6 = sshll.u32 %s164_s27, 2  ;;  %1997 = vmatpush3.bf16.msra.mxu1 %v2091_v23  ;;  %v2066_v29 = vld [vmem:[#allocation8 + $0x84] ss:$8 sps:$4 sm:$0xff]   ;;  %v2096_v31 = vld [vmem:[#allocation9 + $0x58] sm:$0xff]   ;;  %v2068_v32 = vld [vmem:[#allocation8 + $0x80] ss:$8 sps:$4 sm:$0xff]  }
  0x87   : > { %s2728_s28 = sadd.s32 %s1993_s6, %s167_s29  ;;  %1998 = vmatprep.subr.bf16.mxu1 %v2092_v25  ;;  %v2069_v33 = vld [vmem:[#allocation8 + $0x94] ss:$8 sps:$4 sm:$0xff]   ;;  %v2071_v34 = vld [vmem:[#allocation8 + $0x90] ss:$8 sps:$4 sm:$0xff]   ;;  %v2072_v35 = vld [vmem:[#allocation8 + $0xa4] ss:$8 sps:$4 sm:$0xff]  }
  0x88   : > { %395 = vmatpush1.bf16.msra.mxu0 %v2050_v8  ;;  %s171_s30 = scalar_lea.vmem [#allocation2], %s2728_s28  ;;  %v2074_v36 = vld [vmem:[#allocation8 + $0xa0] ss:$8 sps:$4 sm:$0xff]   ;;  %v2075_v37 = vld [vmem:[#allocation8 + $0xb4] ss:$8 sps:$4 sm:$0xff]   ;;  %s634_s22 = scalar_lea.vmem [#allocation18], %s2504_s4 }
  0x89   : > { %396 = vmatprep.subr.bf16.mxu0 %v2051_v9  ;;  %v2736_v19 = vld [vmem:[%s171_s30] ss:$2 sm:$0x3]  ;;  %v2077_v38 = vld [vmem:[#allocation8 + $0xb0] ss:$8 sps:$4 sm:$0xff]   ;;  %v2098_v51 = vld [vmem:[#allocation9 + $0x60] sm:$0xff]  }
  0x8a   : > { %v181_v22 = vrot.slane %v2736_v19, %v2731_v15  ;;  %1999 = vmatpush3.bf16.msra.mxu1 %v2093_v27  ;;  %v2078_v39 = vld [vmem:[#allocation8 + $0xc4] ss:$8 sps:$4 sm:$0xff]   ;;  %v2080_v40 = vld [vmem:[#allocation8 + $0xc0] ss:$8 sps:$4 sm:$0xff]   ;;  %v2081_v41 = vld [vmem:[#allocation8 + $0xd4] ss:$8 sps:$4 sm:$0xff]   ;;  %v177_v47 = vrot.slane %v2736_v19, %v2744_v44 }
  0x8b   : > { %2000 = vmatprep.subr.bf16.mxu1 %v2094_v28  ;;  %v2083_v42 = vld [vmem:[#allocation8 + $0xd0] ss:$8 sps:$4 sm:$0xff]   ;;  %v2084_v43 = vld [vmem:[#allocation8 + $0xe4] ss:$8 sps:$4 sm:$0xff]   ;;  %v2086_v45 = vld [vmem:[#allocation8 + $0xe0] ss:$8 sps:$4 sm:$0xff]  }
  0x8c   : > { %397 = vmatpush1.bf16.msra.mxu0 %v2053_v10  ;;  %v2740_v24 = vpack.c.bf16 %v181_v22, %v181_v22  ;;  %v2087_v46 = vld [vmem:[#allocation8 + $0xf4] ss:$8 sps:$4 sm:$0xff]   ;;  %v2089_v48 = vld [vmem:[#allocation8 + $0xf0] ss:$8 sps:$4 sm:$0xff]   ;;  %v2748_v49 = vpack.c.bf16 %v177_v47, %v177_v47  ;;  %v2099_v52 = vld [vmem:[#allocation9 + $0x20] sm:$0xff]   ;;  %p1859_p9 = scmp.ne.s32.totalorder %s636_s2, 0 }
  0x8d   : > { %398 = vmatprep.subr.bf16.mxu0 %v2054_v11  ;;  %v2097_v50 = vld [vmem:[#allocation9 + $0x18] sm:$0xff]   ;;  %v2100_v53 = vld [vmem:[#allocation9 + $0x68] sm:$0xff]   ;;  %v2102_v55 = vld [vmem:[#allocation9 + $0x70] sm:$0xff]   ;;  %v2519_v60 = vmov 1966171168   ;;  %s641_s23 = sshra.s32 (!%p1859_p9), %s2716_s1, 2 }
  0x8e   : > { %422 = vmatprep.mubr.bf16.mxu0 %v2740_v24  ;;  %2001 = vmatpush3.bf16.msra.mxu1 %v2095_v30  ;;  %v2101_v54 = vld [vmem:[#allocation9 + $0x28] sm:$0xff]   ;;  %v2103_v56 = vld [vmem:[#allocation9 + $0x30] sm:$0xff]   ;;  %v2104_v57 = vld [vmem:[#allocation9 + $0x78] sm:$0xff]   ;;  %v437_v61 = vunpack.c.l.s4 %v2519_v60  ;;  %s644_s24 = sand.u32 (!%p1859_p9), 3, %s2716_s1  ;;  %s1994_s10 = sshll.u32 (!%p1859_p9), %s641_s23, 3 }
  0x8f   : > { %2002 = vmatprep.subr.bf16.mxu1 %v2096_v31  ;;  %v2105_v58 = vld [vmem:[#allocation9 + $0x38] sm:$0xff]   ;;  %v218_v59 = vld [vmem:[%s2858_s3] sm:$0x3]  ;;  %650 = sst [smem:[#allocation3]] (!%p1859_p9), %s2721_s0  ;;  %s647_s17 = sadd.s32 (!%p1859_p9), %s1994_s10, %s644_s24 }
  0x90   : > { %399 = vmatpush1.bf16.msra.mxu0 %v2056_v13  ;;  %v383_v62 = vrot.slane %v218_v59, %v2744_v44  ;;  %v387_v63 = vrot.slane %v218_v59, %v2731_v15  ;;  %v438_v3 = vunpack.c.0.s8 %v437_v61  ;;  %s651_s25 = sadd.s32 (!%p1859_p9), 1, %s2716_s1  ;;  %s648_s26 = scalar_lea.vmem (!%p1859_p9), [#allocation17], %s647_s17 }
  0x91   : > { %400 = vmatprep.subr.bf16.mxu0 %v2057_v14  ;;  %652 = sst [smem:[#allocation3 + $0x1]] (!%p1859_p9), %s651_s25  ;;  %649 = vst.msk [vmem:[%s648_s26] ss:$4 sm:$0x3] (!%p1859_p9), %vm2705_vm0, %v2736_v19 }
  0x92   : > { %2003 = vmatpush3.bf16.msra.mxu1 %v2097_v50  ;;  %v2757_v11 = vsub.s32 %v438_v3, %v2726_v12  ;;  %v497_v12 = vld [vmem:[%s2860_s5] sm:$0x1] }
  0x93   : > { %2004 = vmatprep.subr.bf16.mxu1 %v2098_v51 }
  0x94   : > { %401 = vmatpush1.bf16.msra.mxu0 %v2059_v16 }
  0x95   : > { %402 = vmatprep.subr.bf16.mxu0 %v2060_v17 }
  0x96   : > { %2005 = vmatpush3.bf16.msra.mxu1 %v2099_v52 }
  0x97   : > { %2006 = vmatprep.subr.bf16.mxu1 %v2100_v53 }
  0x98   : > { %403 = vmatpush1.bf16.msra.mxu0 %v2062_v18 }
  0x99   : > { %404 = vmatprep.subr.bf16.mxu0 %v2063_v21 }
  0x9a   : > { %2007 = vmatpush3.bf16.msra.mxu1 %v2101_v54 }
  0x9b   : > { %2008 = vmatprep.subr.bf16.mxu1 %v2102_v55 }
  0x9c   : > { %405 = vmatpush1.bf16.msra.mxu0 %v2065_v26 }
  0x9d   : > { %406 = vmatprep.subr.bf16.mxu0 %v2066_v29 }
  0x9e   : > { %2009 = vmatpush3.bf16.msra.mxu1 %v2103_v56 }
  0x9f   : > { %2010 = vmatprep.subr.bf16.mxu1 %v2104_v57 }
  0xa0   : > { %407 = vmatpush1.bf16.msra.mxu0 %v2068_v32 }
  0xa1   : > { %408 = vmatprep.subr.bf16.mxu0 %v2069_v33 }
  0xa2   : > { %2011 = vmatpush3.bf16.msra.mxu1 %v2105_v58 }
  0xa4   : > { %409 = vmatpush1.bf16.msra.mxu0 %v2071_v34 }
  0xa5   : > { %410 = vmatprep.subr.bf16.mxu0 %v2072_v35 }
  0xa8   : > { %411 = vmatpush1.bf16.msra.mxu0 %v2074_v36 }
  0xa9   : > { %412 = vmatprep.subr.bf16.mxu0 %v2075_v37 }
  0xac   : > { %413 = vmatpush1.bf16.msra.mxu0 %v2077_v38 }
  0xad   : > { %414 = vmatprep.subr.bf16.mxu0 %v2078_v39 }
  0xb0   : > { %415 = vmatpush1.bf16.msra.mxu0 %v2080_v40 }
  0xb1   : > { %416 = vmatprep.subr.bf16.mxu0 %v2081_v41 }
  0xb4   : > { %417 = vmatpush1.bf16.msra.mxu0 %v2083_v42 }
  0xb5   : > { %418 = vmatprep.subr.bf16.mxu0 %v2084_v43 }
  0xb8   : > { %419 = vmatpush1.bf16.msra.mxu0 %v2086_v45 }
  0xb9   : > { %420 = vmatprep.subr.bf16.mxu0 %v2087_v46 }
  0xbc   : > { %421 = vmatpush1.bf16.msra.mxu0 %v2089_v48 }
  0xbf   : > { %423 = vmatmul.mubr.bf16.vlgmr.msra.gmra.mrb[0].mxu0 %v2748_v49 }
 0x192   : > { %v424_v0 = vpop.f32.mrb[0].mxu0 }
 0x193   : > { %v425_v4 = vadd.f32 %v424_v0, %v383_v62  ;;  %v426_v5 = vpop.f32.mrb[1].mxu0 }
 0x194   : > { %v427_v6 = vadd.f32 %v426_v5, %v387_v63  ;;  %v428_v7 = vpop.f32.mrb[2].mxu0 }
 0x195   : > { %v431_v8 = vmax.f32 %v425_v4, 0.0  ;;  %v429_v9 = vpop.f32.mrb[3].mxu0 }
 0x196   : > { %v432_v10 = vmax.f32 %v427_v6, 0.0 }
 0x198   : > { %v435_v13 = vcombine.low %v431_v8, %v432_v10 }
 0x19a   : > { %v442_v14 = vrot.slane %v435_v13, %v2757_v11 }
 0x19c   : > { %v449_v16 = vrot.slane %v442_v14, %v2757_v11 }
 0x19e   : > { %v451_v17 = vadd.f32 %v449_v16, %v2736_v19 }
 0x1a0   : > { %v460_v18 = vrot.slane %v451_v17, %v2731_v15  ;;  %v456_v20 = vrot.slane %v451_v17, %v2744_v44 }
 0x1a2   : > { %v464_v21 = vpack.c.bf16 %v460_v18, %v460_v18  ;;  %v463_v22 = vpack.c.bf16 %v456_v20, %v456_v20 }
 0x1a4   : > { %626 = vmatprep.mubr.bf16.mxu1 %v464_v21 }
 0x1a5   : > { %627 = vmatmul.mubr.bf16.vlgmr.msra.gmra.mrb[0].mxu1 %v463_v22 }
 0x278   : > { %v2012_v23 = vpop.f32.mrb[0].mxu1  ;;  %640 = sbr.rel (%p1859_p9) target bundleno = 639 (0x27f), region = 96 }
 0x279   : > { %v2013_v25 = vpop.f32.mrb[1].mxu1 }
 0x27a   : > { %v2014_v26 = vadd.f32 %v2013_v25, %v2012_v23  ;;  %v2015_v27 = vpop.f32.mrb[2].mxu1 }
 0x27b   : > { %v2016_v28 = vpop.f32.mrb[3].mxu1 }
 0x27c   : > { %v629_v29 = vadd.f32 %v2014_v26, %v497_v12 }
 0x27e   : > { %635 = vst [vmem:[%s634_s22] sm:$0x1] %v629_v29 }
 0x27f PF: > { %p1862_p10 = scmp.ne.s32.totalorder %s636_s2, 1 }
 0x280   : > { %v2106_v30 = vld [vmem:[#allocation11 + $0x4] ss:$8 sps:$4 sm:$0xff] (!%p1862_p10)   ;;  %893 = vmatprep.mubr.bf16.mxu0 (!%p1862_p10), %v2740_v24  ;;  %v2108_v31 = vld [vmem:[#allocation11] ss:$8 sps:$4 sm:$0xff] (!%p1862_p10)   ;;  %v2109_v32 = vld [vmem:[#allocation11 + $0x14] ss:$8 sps:$4 sm:$0xff] (!%p1862_p10)  }
 0x281   : > { %656 = sbr.rel (%p1862_p10) target bundleno = 1226 (0x4ca), region = 100  ;;  %861 = vmatprep.subr.bf16.mxu0 (!%p1862_p10), %v2106_v30  ;;  %v2111_v33 = vld [vmem:[#allocation11 + $0x10] ss:$8 sps:$4 sm:$0xff] (!%p1862_p10)   ;;  %v2112_v34 = vld [vmem:[#allocation11 + $0x24] ss:$8 sps:$4 sm:$0xff] (!%p1862_p10)   ;;  %s1757_s27 = sadd.s32 (!%p1862_p10), 1, %s2718_s19 }
 0x282   : > { %862 = vmatpush1.bf16.msra.mxu0 (!%p1862_p10), %v2108_v31  ;;  %v2114_v35 = vld [vmem:[#allocation11 + $0x20] ss:$8 sps:$4 sm:$0xff] (!%p1862_p10)   ;;  %v2115_v36 = vld [vmem:[#allocation11 + $0x34] ss:$8 sps:$4 sm:$0xff] (!%p1862_p10)   ;;  %v2117_v37 = vld [vmem:[#allocation11 + $0x30] ss:$8 sps:$4 sm:$0xff] (!%p1862_p10)  }
 0x283   : > { %863 = vmatprep.subr.bf16.mxu0 (!%p1862_p10), %v2109_v32  ;;  %v2118_v38 = vld [vmem:[#allocation11 + $0x44] ss:$8 sps:$4 sm:$0xff] (!%p1862_p10)   ;;  %v2120_v39 = vld [vmem:[#allocation11 + $0x40] ss:$8 sps:$4 sm:$0xff] (!%p1862_p10)   ;;  %v2121_v40 = vld [vmem:[#allocation11 + $0x54] ss:$8 sps:$4 sm:$0xff] (!%p1862_p10)  }
 0x284   : > { %v2123_v41 = vld [vmem:[#allocation11 + $0x50] ss:$8 sps:$4 sm:$0xff] (!%p1862_p10)   ;;  %v2124_v42 = vld [vmem:[#allocation11 + $0x64] ss:$8 sps:$4 sm:$0xff] (!%p1862_p10)   ;;  %v2126_v43 = vld [vmem:[#allocation11 + $0x60] ss:$8 sps:$4 sm:$0xff] (!%p1862_p10)  }
 0x285   : > { %v2127_v45 = vld [vmem:[#allocation11 + $0x74] ss:$8 sps:$4 sm:$0xff] (!%p1862_p10)   ;;  %v2129_v46 = vld [vmem:[#allocation11 + $0x70] ss:$8 sps:$4 sm:$0xff] (!%p1862_p10)   ;;  %v2130_v47 = vld [vmem:[#allocation11 + $0x84] ss:$8 sps:$4 sm:$0xff] (!%p1862_p10)  }
 0x286   : > { %864 = vmatpush1.bf16.msra.mxu0 (!%p1862_p10), %v2111_v33  ;;  %v2132_v48 = vld [vmem:[#allocation11 + $0x80] ss:$8 sps:$4 sm:$0xff] (!%p1862_p10)   ;;  %v2133_v50 = vld [vmem:[#allocation11 + $0x94] ss:$8 sps:$4 sm:$0xff] (!%p1862_p10)   ;;  %v2135_v51 = vld [vmem:[#allocation11 + $0x90] ss:$8 sps:$4 sm:$0xff] (!%p1862_p10)  }
 0x287   : > { %865 = vmatprep.subr.bf16.mxu0 (!%p1862_p10), %v2112_v34  ;;  %v2136_v52 = vld [vmem:[#allocation11 + $0xa4] ss:$8 sps:$4 sm:$0xff] (!%p1862_p10)   ;;  %v2138_v53 = vld [vmem:[#allocation11 + $0xa0] ss:$8 sps:$4 sm:$0xff] (!%p1862_p10)   ;;  %v2139_v54 = vld [vmem:[#allocation11 + $0xb4] ss:$8 sps:$4 sm:$0xff] (!%p1862_p10)  }
 0x288   : > { %v2141_v55 = vld [vmem:[#allocation11 + $0xb0] ss:$8 sps:$4 sm:$0xff]   ;;  %v2142_v56 = vld [vmem:[#allocation11 + $0xc4] ss:$8 sps:$4 sm:$0xff]   ;;  %v2204_v58 = vld [vmem:[#allocation12] ss:$8 sps:$4 sm:$0xff]  }
 0x289   : > { %v2202_v57 = vld [vmem:[#allocation12 + $0x4] ss:$8 sps:$4 sm:$0xff]   ;;  %v2205_v59 = vld [vmem:[#allocation12 + $0x14] ss:$8 sps:$4 sm:$0xff]   ;;  %v2207_v60 = vld [vmem:[#allocation12 + $0x10] ss:$8 sps:$4 sm:$0xff]  }
 0x28a   : > { %866 = vmatpush1.bf16.msra.mxu0 %v2114_v35  ;;  %1140 = vmatprep.subr.bf16.mxu1 %v2202_v57  ;;  %v2144_v61 = vld [vmem:[#allocation11 + $0xc0] ss:$8 sps:$4 sm:$0xff]   ;;  %v2208_v62 = vld [vmem:[#allocation12 + $0x24] ss:$8 sps:$4 sm:$0xff]   ;;  %v2145_v63 = vld [vmem:[#allocation11 + $0xd4] ss:$8 sps:$4 sm:$0xff]  }
 0x28b   : > { %867 = vmatprep.subr.bf16.mxu0 %v2115_v36  ;;  %1141 = vmatpush1.bf16.msra.mxu1 %v2204_v58  ;;  %v2210_v0 = vld [vmem:[#allocation12 + $0x20] ss:$8 sps:$4 sm:$0xff]   ;;  %v2147_v3 = vld [vmem:[#allocation11 + $0xd0] ss:$8 sps:$4 sm:$0xff]   ;;  %v2211_v4 = vld [vmem:[#allocation12 + $0x34] ss:$8 sps:$4 sm:$0xff]  }
 0x28c   : > { %1142 = vmatprep.subr.bf16.mxu1 %v2205_v59  ;;  %v2148_v5 = vld [vmem:[#allocation11 + $0xe4] ss:$8 sps:$4 sm:$0xff]   ;;  %v2213_v6 = vld [vmem:[#allocation12 + $0x30] ss:$8 sps:$4 sm:$0xff]   ;;  %v2150_v7 = vld [vmem:[#allocation11 + $0xe0] ss:$8 sps:$4 sm:$0xff]  }
 0x28d   : > { %v2214_v8 = vld [vmem:[#allocation12 + $0x44] ss:$8 sps:$4 sm:$0xff]   ;;  %v2151_v9 = vld [vmem:[#allocation11 + $0xf4] ss:$8 sps:$4 sm:$0xff]   ;;  %v2153_v10 = vld [vmem:[#allocation11 + $0xf0] ss:$8 sps:$4 sm:$0xff]  }
 0x28e   : > { %868 = vmatpush1.bf16.msra.mxu0 %v2117_v37  ;;  %v2156_v13 = vld [vmem:[#allocation14 + $0x4] ss:$8 sps:$4 sm:$0xff]   ;;  %v2216_v14 = vld [vmem:[#allocation12 + $0x40] ss:$8 sps:$4 sm:$0xff]   ;;  %v2217_v16 = vld [vmem:[#allocation12 + $0x54] ss:$8 sps:$4 sm:$0xff]  }
 0x28f   : > { %869 = vmatprep.subr.bf16.mxu0 %v2118_v38  ;;  %1143 = vmatpush1.bf16.msra.mxu1 %v2207_v60  ;;  %v2219_v17 = vld [vmem:[#allocation12 + $0x50] ss:$8 sps:$4 sm:$0xff]   ;;  %v2154_v18 = vld [vmem:[#allocation14] ss:$8 sps:$4 sm:$0xff]   ;;  %v2159_v20 = vld [vmem:[#allocation14 + $0x14] ss:$8 sps:$4 sm:$0xff]  }
 0x290   : > { %1144 = vmatprep.subr.bf16.mxu1 %v2208_v62  ;;  %v2220_v21 = vld [vmem:[#allocation12 + $0x64] ss:$8 sps:$4 sm:$0xff]   ;;  %v2222_v22 = vld [vmem:[#allocation12 + $0x60] ss:$8 sps:$4 sm:$0xff]   ;;  %v2157_v23 = vld [vmem:[#allocation14 + $0x10] ss:$8 sps:$4 sm:$0xff]  }
 0x291   : > { %v2223_v12 = vld [vmem:[#allocation12 + $0x74] ss:$8 sps:$4 sm:$0xff]   ;;  %v2162_v25 = vld [vmem:[#allocation14 + $0x24] ss:$8 sps:$4 sm:$0xff]   ;;  %v2225_v26 = vld [vmem:[#allocation12 + $0x70] ss:$8 sps:$4 sm:$0xff]  }
 0x292   : > { %870 = vmatpush1.bf16.msra.mxu0 %v2120_v39  ;;  %v2160_v27 = vld [vmem:[#allocation14 + $0x20] ss:$8 sps:$4 sm:$0xff]   ;;  %v2226_v28 = vld [vmem:[#allocation12 + $0x84] ss:$8 sps:$4 sm:$0xff]   ;;  %v2165_v29 = vld [vmem:[#allocation14 + $0x34] ss:$8 sps:$4 sm:$0xff]  }
 0x293   : > { %871 = vmatprep.subr.bf16.mxu0 %v2121_v40  ;;  %1145 = vmatpush1.bf16.msra.mxu1 %v2210_v0  ;;  %v2228_v30 = vld [vmem:[#allocation12 + $0x80] ss:$8 sps:$4 sm:$0xff]   ;;  %v2163_v31 = vld [vmem:[#allocation14 + $0x30] ss:$8 sps:$4 sm:$0xff]   ;;  %v2229_v32 = vld [vmem:[#allocation12 + $0x94] ss:$8 sps:$4 sm:$0xff]  }
 0x294   : > { %1146 = vmatprep.subr.bf16.mxu1 %v2211_v4  ;;  %v2168_v33 = vld [vmem:[#allocation14 + $0x44] ss:$8 sps:$4 sm:$0xff]   ;;  %v2166_v34 = vld [vmem:[#allocation14 + $0x40] ss:$8 sps:$4 sm:$0xff]   ;;  %v2171_v36 = vld [vmem:[#allocation14 + $0x54] ss:$8 sps:$4 sm:$0xff]  }
 0x295   : > { %v2232_v35 = vld [vmem:[#allocation12 + $0xa4] ss:$8 sps:$4 sm:$0xff]   ;;  %v2234_v37 = vld [vmem:[#allocation12 + $0xa0] ss:$8 sps:$4 sm:$0xff]   ;;  %v2169_v38 = vld [vmem:[#allocation14 + $0x50] ss:$8 sps:$4 sm:$0xff]  }
 0x296   : > { %872 = vmatpush1.bf16.msra.mxu0 %v2123_v41  ;;  %v2235_v39 = vld [vmem:[#allocation12 + $0xb4] ss:$8 sps:$4 sm:$0xff]   ;;  %v2174_v40 = vld [vmem:[#allocation14 + $0x64] ss:$8 sps:$4 sm:$0xff]   ;;  %v2172_v41 = vld [vmem:[#allocation14 + $0x60] ss:$8 sps:$4 sm:$0xff]  }
 0x297   : > { %873 = vmatprep.subr.bf16.mxu0 %v2124_v42  ;;  %1147 = vmatpush1.bf16.msra.mxu1 %v2213_v6  ;;  %v2177_v42 = vld [vmem:[#allocation14 + $0x74] ss:$8 sps:$4 sm:$0xff]   ;;  %v2193_v57 = vld [vmem:[#allocation14 + $0xd0] ss:$8 sps:$4 sm:$0xff]   ;;  %v2198_v58 = vld [vmem:[#allocation14 + $0xe4] ss:$8 sps:$4 sm:$0xff]  }
 0x298   : > { %1148 = vmatprep.subr.bf16.mxu1 %v2214_v8  ;;  %v2196_v59 = vld [vmem:[#allocation14 + $0xe0] ss:$8 sps:$4 sm:$0xff]   ;;  %v2201_v60 = vld [vmem:[#allocation14 + $0xf4] ss:$8 sps:$4 sm:$0xff]   ;;  %v2237_v62 = vld [vmem:[#allocation12 + $0xb0] ss:$8 sps:$4 sm:$0xff]  }
 0x299   : > { %v2240_v0 = vld [vmem:[#allocation12 + $0xc0] ss:$8 sps:$4 sm:$0xff]   ;;  %v2243_v4 = vld [vmem:[#allocation12 + $0xd0] ss:$8 sps:$4 sm:$0xff]   ;;  %1758 = sst [smem:[#allocation3]] %s1757_s27  ;;  %s1748_s2 = sshra.s32 %s2718_s19, 1 }
 0x29a   : > { %874 = vmatpush1.bf16.msra.mxu0 %v2126_v43  ;;  %v2175_v43 = vld [vmem:[#allocation14 + $0x70] ss:$8 sps:$4 sm:$0xff]   ;;  %v2246_v6 = vld [vmem:[#allocation12 + $0xe0] ss:$8 sps:$4 sm:$0xff]   ;;  %s1751_s18 = sand.u32 1, %s2718_s19  ;;  %s1995_s21 = sshll.u32 %s1748_s2, 2 }
 0x29b   : > { %875 = vmatprep.subr.bf16.mxu0 %v2127_v45  ;;  %1149 = vmatpush1.bf16.msra.mxu1 %v2216_v14  ;;  %v2180_v45 = vld [vmem:[#allocation14 + $0x84] ss:$8 sps:$4 sm:$0xff]   ;;  %v2249_v8 = vld [vmem:[#allocation12 + $0xf0] ss:$8 sps:$4 sm:$0xff]   ;;  %s1754_s22 = sadd.s32 %s1995_s21, %s1751_s18 }
 0x29c   : > { %1150 = vmatprep.subr.bf16.mxu1 %v2217_v16  ;;  %s1755_s23 = scalar_lea.vmem [#allocation2], %s1754_s22 }
 0x29e   : > { %876 = vmatpush1.bf16.msra.mxu0 %v2129_v46  ;;  %v2178_v46 = vld [vmem:[#allocation14 + $0x80] ss:$8 sps:$4 sm:$0xff]  }
 0x29f   : > { %877 = vmatprep.subr.bf16.mxu0 %v2130_v47  ;;  %1151 = vmatpush1.bf16.msra.mxu1 %v2219_v17  ;;  %v2183_v47 = vld [vmem:[#allocation14 + $0x94] ss:$8 sps:$4 sm:$0xff]  }
 0x2a0   : > { %1152 = vmatprep.subr.bf16.mxu1 %v2220_v21 }
 0x2a2   : > { %878 = vmatpush1.bf16.msra.mxu0 %v2132_v48  ;;  %v2181_v48 = vld [vmem:[#allocation14 + $0x90] ss:$8 sps:$4 sm:$0xff]  }
 0x2a3   : > { %879 = vmatprep.subr.bf16.mxu0 %v2133_v50  ;;  %1153 = vmatpush1.bf16.msra.mxu1 %v2222_v22  ;;  %v2186_v50 = vld [vmem:[#allocation14 + $0xa4] ss:$8 sps:$4 sm:$0xff]  }
 0x2a4   : > { %1154 = vmatprep.subr.bf16.mxu1 %v2223_v12 }
 0x2a6   : > { %880 = vmatpush1.bf16.msra.mxu0 %v2135_v51  ;;  %v2184_v51 = vld [vmem:[#allocation14 + $0xa0] ss:$8 sps:$4 sm:$0xff]  }
 0x2a7   : > { %881 = vmatprep.subr.bf16.mxu0 %v2136_v52  ;;  %1155 = vmatpush1.bf16.msra.mxu1 %v2225_v26  ;;  %v2189_v52 = vld [vmem:[#allocation14 + $0xb4] ss:$8 sps:$4 sm:$0xff]  }
 0x2a8   : > { %1156 = vmatprep.subr.bf16.mxu1 %v2226_v28 }
 0x2aa   : > { %882 = vmatpush1.bf16.msra.mxu0 %v2138_v53  ;;  %v2187_v53 = vld [vmem:[#allocation14 + $0xb0] ss:$8 sps:$4 sm:$0xff]  }
 0x2ab   : > { %883 = vmatprep.subr.bf16.mxu0 %v2139_v54  ;;  %1157 = vmatpush1.bf16.msra.mxu1 %v2228_v30  ;;  %v2192_v54 = vld [vmem:[#allocation14 + $0xc4] ss:$8 sps:$4 sm:$0xff]  }
 0x2ac   : > { %1158 = vmatprep.subr.bf16.mxu1 %v2229_v32  ;;  %v2250_v32 = vld [vmem:[#allocation15] ss:$8 sps:$4 sm:$0xff]  }
 0x2ae   : > { %884 = vmatpush1.bf16.msra.mxu0 %v2141_v55  ;;  %v2190_v55 = vld [vmem:[#allocation14 + $0xc0] ss:$8 sps:$4 sm:$0xff]  }
 0x2af   : > { %885 = vmatprep.subr.bf16.mxu0 %v2142_v56  ;;  %v2195_v56 = vld [vmem:[#allocation14 + $0xd4] ss:$8 sps:$4 sm:$0xff]  }
 0x2b2   : > { %886 = vmatpush1.bf16.msra.mxu0 %v2144_v61  ;;  %v2199_v61 = vld [vmem:[#allocation14 + $0xf0] ss:$8 sps:$4 sm:$0xff]  }
 0x2b3   : > { %887 = vmatprep.subr.bf16.mxu0 %v2145_v63  ;;  %v2238_v63 = vld [vmem:[#allocation12 + $0xc4] ss:$8 sps:$4 sm:$0xff]  }
 0x2b6   : > { %888 = vmatpush1.bf16.msra.mxu0 %v2147_v3  ;;  %v2241_v3 = vld [vmem:[#allocation12 + $0xd4] ss:$8 sps:$4 sm:$0xff]  }
 0x2b7   : > { %889 = vmatprep.subr.bf16.mxu0 %v2148_v5  ;;  %v2244_v5 = vld [vmem:[#allocation12 + $0xe4] ss:$8 sps:$4 sm:$0xff]  }
 0x2ba   : > { %890 = vmatpush1.bf16.msra.mxu0 %v2150_v7  ;;  %v2247_v7 = vld [vmem:[#allocation12 + $0xf4] ss:$8 sps:$4 sm:$0xff]  }
 0x2bb   : > { %891 = vmatprep.subr.bf16.mxu0 %v2151_v9  ;;  %v2252_v9 = vld [vmem:[#allocation15 + $0x4] ss:$8 sps:$4 sm:$0xff]  }
 0x2be   : > { %892 = vmatpush1.bf16.msra.mxu0 %v2153_v10 }
 0x2bf   : > { %1406 = vmatprep.subr.bf16.mxu0 %v2156_v13 }
 0x2c1   : > { %894 = vmatmul.mubr.bf16.vlgmr.msra.gmra.mrb[0].mxu0 %v2748_v49 }
 0x2c2   : > { %1407 = vmatpush1.bf16.msra.mxu0 %v2154_v18  ;;  %1438 = vmatprep.mubr.bf16.mxu0 %v2740_v24  ;;  %v2231_v24 = vld [vmem:[#allocation12 + $0x90] ss:$8 sps:$4 sm:$0xff]  }
 0x2c3   : > { %1408 = vmatprep.subr.bf16.mxu0 %v2159_v20  ;;  %1159 = vmatpush1.bf16.msra.mxu1 %v2231_v24  ;;  %v2253_v24 = vld [vmem:[#allocation15 + $0x10] ss:$8 sps:$4 sm:$0xff]  }
 0x2c4   : > { %1160 = vmatprep.subr.bf16.mxu1 %v2232_v35  ;;  %v2256_v35 = vld [vmem:[#allocation15 + $0x20] ss:$8 sps:$4 sm:$0xff]  }
 0x2c6   : > { %1409 = vmatpush1.bf16.msra.mxu0 %v2157_v23 }
 0x2c7   : > { %1410 = vmatprep.subr.bf16.mxu0 %v2162_v25  ;;  %1161 = vmatpush1.bf16.msra.mxu1 %v2234_v37  ;;  %v2259_v37 = vld [vmem:[#allocation15 + $0x30] ss:$8 sps:$4 sm:$0xff]  }
 0x2c8   : > { %1162 = vmatprep.subr.bf16.mxu1 %v2235_v39  ;;  %v2262_v39 = vld [vmem:[#allocation15 + $0x40] ss:$8 sps:$4 sm:$0xff]  }
 0x2ca   : > { %1411 = vmatpush1.bf16.msra.mxu0 %v2160_v27 }
 0x2cb   : > { %1412 = vmatprep.subr.bf16.mxu0 %v2165_v29  ;;  %1163 = vmatpush1.bf16.msra.mxu1 %v2237_v62 }
 0x2cc   : > { %1164 = vmatprep.subr.bf16.mxu1 %v2238_v63 }
 0x2ce   : > { %1413 = vmatpush1.bf16.msra.mxu0 %v2163_v31 }
 0x2cf   : > { %1414 = vmatprep.subr.bf16.mxu0 %v2168_v33  ;;  %1165 = vmatpush1.bf16.msra.mxu1 %v2240_v0  ;;  %v2255_v33 = vld [vmem:[#allocation15 + $0x14] ss:$8 sps:$4 sm:$0xff]  }
 0x2d0   : > { %1166 = vmatprep.subr.bf16.mxu1 %v2241_v3  ;;  %v2291_v0 = vld [vmem:[#allocation15 + $0xd4] ss:$8 sps:$4 sm:$0xff]  }
 0x2d2   : > { %1415 = vmatpush1.bf16.msra.mxu0 %v2166_v34  ;;  %v2258_v34 = vld [vmem:[#allocation15 + $0x24] ss:$8 sps:$4 sm:$0xff]  }
 0x2d3   : > { %1416 = vmatprep.subr.bf16.mxu0 %v2171_v36  ;;  %1167 = vmatpush1.bf16.msra.mxu1 %v2243_v4  ;;  %v2261_v36 = vld [vmem:[#allocation15 + $0x34] ss:$8 sps:$4 sm:$0xff]  }
 0x2d4   : > { %1168 = vmatprep.subr.bf16.mxu1 %v2244_v5 }
 0x2d6   : > { %1417 = vmatpush1.bf16.msra.mxu0 %v2169_v38  ;;  %v2264_v38 = vld [vmem:[#allocation15 + $0x44] ss:$8 sps:$4 sm:$0xff]  }
 0x2d7   : > { %1418 = vmatprep.subr.bf16.mxu0 %v2174_v40  ;;  %1169 = vmatpush1.bf16.msra.mxu1 %v2246_v6  ;;  %v2267_v40 = vld [vmem:[#allocation15 + $0x54] ss:$8 sps:$4 sm:$0xff]  }
 0x2d8   : > { %1170 = vmatprep.subr.bf16.mxu1 %v2247_v7 }
 0x2da   : > { %1419 = vmatpush1.bf16.msra.mxu0 %v2172_v41  ;;  %v2265_v41 = vld [vmem:[#allocation15 + $0x50] ss:$8 sps:$4 sm:$0xff]  }
 0x2db   : > { %1420 = vmatprep.subr.bf16.mxu0 %v2177_v42  ;;  %1171 = vmatpush1.bf16.msra.mxu1 %v2249_v8  ;;  %v2270_v42 = vld [vmem:[#allocation15 + $0x64] ss:$8 sps:$4 sm:$0xff]   ;;  %v2289_v8 = vld [vmem:[#allocation15 + $0xd0] ss:$8 sps:$4 sm:$0xff]  }
 0x2dc   : > { %1685 = vmatprep.subr.bf16.mxu1 %v2252_v9  ;;  %v2294_v9 = vld [vmem:[#allocation15 + $0xe4] ss:$8 sps:$4 sm:$0xff]  }
 0x2de   : > { %1421 = vmatpush1.bf16.msra.mxu0 %v2175_v43  ;;  %v2268_v43 = vld [vmem:[#allocation15 + $0x60] ss:$8 sps:$4 sm:$0xff]  }
 0x2df   : > { %1422 = vmatprep.subr.bf16.mxu0 %v2180_v45  ;;  %v2273_v45 = vld [vmem:[#allocation15 + $0x74] ss:$8 sps:$4 sm:$0xff]  }
 0x2e2   : > { %1423 = vmatpush1.bf16.msra.mxu0 %v2178_v46  ;;  %v2271_v46 = vld [vmem:[#allocation15 + $0x70] ss:$8 sps:$4 sm:$0xff]  }
 0x2e3   : > { %1424 = vmatprep.subr.bf16.mxu0 %v2183_v47  ;;  %v2276_v47 = vld [vmem:[#allocation15 + $0x84] ss:$8 sps:$4 sm:$0xff]  }
 0x2e6   : > { %1425 = vmatpush1.bf16.msra.mxu0 %v2181_v48  ;;  %v2274_v48 = vld [vmem:[#allocation15 + $0x80] ss:$8 sps:$4 sm:$0xff]  }
 0x2e7   : > { %1426 = vmatprep.subr.bf16.mxu0 %v2186_v50  ;;  %v2279_v50 = vld [vmem:[#allocation15 + $0x94] ss:$8 sps:$4 sm:$0xff]  }
 0x2ea   : > { %1427 = vmatpush1.bf16.msra.mxu0 %v2184_v51  ;;  %v2277_v51 = vld [vmem:[#allocation15 + $0x90] ss:$8 sps:$4 sm:$0xff]  }
 0x2eb   : > { %1428 = vmatprep.subr.bf16.mxu0 %v2189_v52  ;;  %v2282_v52 = vld [vmem:[#allocation15 + $0xa4] ss:$8 sps:$4 sm:$0xff]  }
 0x2ee   : > { %1429 = vmatpush1.bf16.msra.mxu0 %v2187_v53  ;;  %v2280_v53 = vld [vmem:[#allocation15 + $0xa0] ss:$8 sps:$4 sm:$0xff]  }
 0x2ef   : > { %1430 = vmatprep.subr.bf16.mxu0 %v2192_v54  ;;  %v2285_v54 = vld [vmem:[#allocation15 + $0xb4] ss:$8 sps:$4 sm:$0xff]  }
 0x2f2   : > { %1431 = vmatpush1.bf16.msra.mxu0 %v2190_v55  ;;  %v1234_v55 = vld [vmem:[%s2866_s11] sm:$0x3] }
 0x2f3   : > { %1432 = vmatprep.subr.bf16.mxu0 %v2195_v56  ;;  %v2283_v56 = vld [vmem:[#allocation15 + $0xb0] ss:$8 sps:$4 sm:$0xff]  }
 0x2f6   : > { %1433 = vmatpush1.bf16.msra.mxu0 %v2193_v57  ;;  %v1399_v57 = vrot.slane %v1234_v55, %v2744_v44 }
 0x2f7   : > { %1434 = vmatprep.subr.bf16.mxu0 %v2198_v58  ;;  %v2288_v58 = vld [vmem:[#allocation15 + $0xc4] ss:$8 sps:$4 sm:$0xff]  }
 0x2fa   : > { %1435 = vmatpush1.bf16.msra.mxu0 %v2196_v59  ;;  %v1403_v59 = vrot.slane %v1234_v55, %v2731_v15 }
 0x2fb   : > { %1436 = vmatprep.subr.bf16.mxu0 %v2201_v60 }
 0x2fe   : > { %1437 = vmatpush1.bf16.msra.mxu0 %v2199_v61  ;;  %v2286_v61 = vld [vmem:[#allocation15 + $0xc0] ss:$8 sps:$4 sm:$0xff]  }
 0x301   : > { %1439 = vmatmul.mubr.bf16.vlgmr.msra.gmra.mrb[4].mxu0 %v2748_v49  ;;  %v689_v49 = vld [vmem:[%s2862_s7] sm:$0x3] }
 0x302   : > { %v854_v10 = vrot.slane %v689_v49, %v2744_v44  ;;  %v858_v13 = vrot.slane %v689_v49, %v2731_v15 }
 0x394   : > { %v895_v14 = vpop.f32.mrb[0].mxu0 }
 0x395   : > { %v896_v16 = vadd.f32 %v895_v14, %v854_v10  ;;  %v897_v17 = vpop.f32.mrb[1].mxu0  ;;  %v2297_v14 = vld [vmem:[#allocation15 + $0xf4] ss:$8 sps:$4 sm:$0xff]  }
 0x396   : > { %v898_v18 = vadd.f32 %v897_v17, %v858_v13  ;;  %v899_v20 = vpop.f32.mrb[2].mxu0  ;;  %v2292_v13 = vld [vmem:[#allocation15 + $0xe0] ss:$8 sps:$4 sm:$0xff]  }
 0x397   : > { %v902_v21 = vmax.f32 %v896_v16, 0.0  ;;  %v900_v22 = vpop.f32.mrb[3].mxu0 }
 0x398   : > { %v903_v23 = vmax.f32 %v898_v18, 0.0  ;;  %v2295_v18 = vld [vmem:[#allocation15 + $0xf0] ss:$8 sps:$4 sm:$0xff]  }
 0x39a   : > { %v906_v12 = vcombine.low %v902_v21, %v903_v23 }
 0x39c   : > { %v913_v25 = vrot.slane %v906_v12, %v2757_v11  ;;  %v968_v12 = vld [vmem:[%s2864_s9] sm:$0x3] }
 0x39e   : > { %v920_v26 = vrot.slane %v913_v25, %v2757_v11  ;;  %v1137_v25 = vrot.slane %v968_v12, %v2731_v15 }
 0x3a0   : > { %v2788_v27 = vadd.f32 %v920_v26, %v2736_v19 }
 0x3a2   : > { %v931_v28 = vrot.slane %v2788_v27, %v2731_v15  ;;  %v927_v29 = vrot.slane %v2788_v27, %v2744_v44 }
 0x3a4   : > { %v935_v30 = vpack.c.bf16 %v931_v28, %v931_v28  ;;  %v934_v31 = vpack.c.bf16 %v927_v29, %v927_v29 }
 0x3a6   : > { %1172 = vmatprep.mubr.bf16.mxu1 %v935_v30 }
 0x3a7   : > { %1173 = vmatmul.mubr.bf16.vlgmr.msra.gmra.mrb[0].mxu1 %v934_v31 }
 0x3a8   : > { %1686 = vmatpush1.bf16.msra.mxu1 %v2250_v32 }
 0x3a9   : > { %1687 = vmatprep.subr.bf16.mxu1 %v2255_v33 }
 0x3ac   : > { %1688 = vmatpush1.bf16.msra.mxu1 %v2253_v24 }
 0x3ad   : > { %1689 = vmatprep.subr.bf16.mxu1 %v2258_v34 }
 0x3b0   : > { %1690 = vmatpush1.bf16.msra.mxu1 %v2256_v35  ;;  %v1513_v35 = vld [vmem:[%s2868_s13] sm:$0x3] }
 0x3b1   : > { %1691 = vmatprep.subr.bf16.mxu1 %v2261_v36  ;;  %v1678_v36 = vrot.slane %v1513_v35, %v2744_v44 }
 0x3b4   : > { %1692 = vmatpush1.bf16.msra.mxu1 %v2259_v37  ;;  %v1682_v37 = vrot.slane %v1513_v35, %v2731_v15 }
 0x3b5   : > { %1693 = vmatprep.subr.bf16.mxu1 %v2264_v38 }
 0x3b8   : > { %1694 = vmatpush1.bf16.msra.mxu1 %v2262_v39 }
 0x3b9   : > { %1695 = vmatprep.subr.bf16.mxu1 %v2267_v40 }
 0x3bc   : > { %1696 = vmatpush1.bf16.msra.mxu1 %v2265_v41 }
 0x3bd   : > { %1697 = vmatprep.subr.bf16.mxu1 %v2270_v42 }
 0x3c0   : > { %1698 = vmatpush1.bf16.msra.mxu1 %v2268_v43 }
 0x3c1   : > { %1699 = vmatprep.subr.bf16.mxu1 %v2273_v45 }
 0x3c4   : > { %1700 = vmatpush1.bf16.msra.mxu1 %v2271_v46 }
 0x3c5   : > { %1701 = vmatprep.subr.bf16.mxu1 %v2276_v47 }
 0x3c8   : > { %1702 = vmatpush1.bf16.msra.mxu1 %v2274_v48 }
 0x3c9   : > { %1703 = vmatprep.subr.bf16.mxu1 %v2279_v50 }
 0x3cc   : > { %1704 = vmatpush1.bf16.msra.mxu1 %v2277_v51 }
 0x3cd   : > { %1705 = vmatprep.subr.bf16.mxu1 %v2282_v52 }
 0x3d0   : > { %1706 = vmatpush1.bf16.msra.mxu1 %v2280_v53 }
 0x3d1   : > { %1707 = vmatprep.subr.bf16.mxu1 %v2285_v54 }
 0x3d4   : > { %v1440_v60 = vpop.f32.mrb[4].mxu0  ;;  %1708 = vmatpush1.bf16.msra.mxu1 %v2283_v56 }
 0x3d5   : > { %v1441_v62 = vadd.f32 %v1440_v60, %v1399_v57  ;;  %v1442_v63 = vpop.f32.mrb[5].mxu0  ;;  %1709 = vmatprep.subr.bf16.mxu1 %v2288_v58 }
 0x3d6   : > { %v1443_v3 = vadd.f32 %v1442_v63, %v1403_v59  ;;  %v1444_v4 = vpop.f32.mrb[6].mxu0 }
 0x3d7   : > { %v1447_v5 = vmax.f32 %v1441_v62, 0.0  ;;  %v1445_v6 = vpop.f32.mrb[7].mxu0 }
 0x3d8   : > { %v1448_v7 = vmax.f32 %v1443_v3, 0.0  ;;  %1710 = vmatpush1.bf16.msra.mxu1 %v2286_v61 }
 0x3d9   : > { %1711 = vmatprep.subr.bf16.mxu1 %v2291_v0 }
 0x3da   : > { %v1451_v49 = vcombine.low %v1447_v5, %v1448_v7 }
 0x3dc   : > { %v1458_v10 = vrot.slane %v1451_v49, %v2757_v11  ;;  %1712 = vmatpush1.bf16.msra.mxu1 %v2289_v8 }
 0x3dd   : > { %1713 = vmatprep.subr.bf16.mxu1 %v2294_v9 }
 0x3de   : > { %v1465_v16 = vrot.slane %v1458_v10, %v2757_v11 }
 0x3e0   : > { %v1467_v17 = vadd.f32 %v1465_v16, %v2736_v19  ;;  %1714 = vmatpush1.bf16.msra.mxu1 %v2292_v13  ;;  %v1133_v19 = vrot.slane %v968_v12, %v2744_v44 }
 0x3e1   : > { %1715 = vmatprep.subr.bf16.mxu1 %v2297_v14 }
 0x3e2   : > { %v1476_v20 = vrot.slane %v1467_v17, %v2731_v15  ;;  %v1472_v21 = vrot.slane %v1467_v17, %v2744_v44 }
 0x3e4   : > { %1716 = vmatpush1.bf16.msra.mxu1 %v2295_v18  ;;  %v1480_v22 = vpack.c.bf16 %v1476_v20, %v1476_v20  ;;  %v1479_v23 = vpack.c.bf16 %v1472_v21, %v1472_v21 }
 0x3e6   : > { %1717 = vmatprep.mubr.bf16.mxu1 %v1480_v22 }
 0x3e7   : > { %1718 = vmatmul.mubr.bf16.vlgmr.msra.gmra.mrb[4].mxu1 %v1479_v23 }
 0x47a   : > { %v1174_v26 = vpop.f32.mrb[0].mxu1 }
 0x47b   : > { %v1175_v28 = vadd.f32 %v1174_v26, %v1133_v19  ;;  %v1176_v29 = vpop.f32.mrb[1].mxu1 }
 0x47c   : > { %v1177_v30 = vadd.f32 %v1176_v29, %v1137_v25  ;;  %v1178_v31 = vpop.f32.mrb[2].mxu1 }
 0x47d   : > { %v1181_v32 = vmax.f32 %v1175_v28, 0.0  ;;  %v1179_v33 = vpop.f32.mrb[3].mxu1 }
 0x47e   : > { %v1182_v24 = vmax.f32 %v1177_v30, 0.0 }
 0x480   : > { %v1185_v34 = vcombine.low %v1181_v32, %v1182_v24 }
 0x482   : > { %v1192_v47 = vrot.slane %v1185_v34, %v2757_v11 }
 0x484   : > { %v1199_v44 = vrot.slane %v1192_v47, %v2757_v11 }
 0x486   : > { %v1201_v52 = vadd.f32 %v1199_v44, %v2788_v27 }
 0x4ba   : > { %v1719_v38 = vpop.f32.mrb[4].mxu1 }
 0x4bb   : > { %v1720_v39 = vadd.f32 %v1719_v38, %v1678_v36  ;;  %v1721_v40 = vpop.f32.mrb[5].mxu1 }
 0x4bc   : > { %v1722_v41 = vadd.f32 %v1721_v40, %v1682_v37  ;;  %v1723_v42 = vpop.f32.mrb[6].mxu1 }
 0x4bd   : > { %v1726_v43 = vmax.f32 %v1720_v39, 0.0  ;;  %v1724_v45 = vpop.f32.mrb[7].mxu1 }
 0x4be   : > { %v1727_v46 = vmax.f32 %v1722_v41, 0.0 }
 0x4c0   : > { %v1730_v48 = vcombine.low %v1726_v43, %v1727_v46 }
 0x4c2   : > { %v1737_v50 = vrot.slane %v1730_v48, %v2757_v11 }
 0x4c4   : > { %v1744_v15 = vrot.slane %v1737_v50, %v2757_v11 }
 0x4c6   : > { %v1746_v51 = vadd.f32 %v1744_v15, %v1467_v17 }
 0x4c8   : > { %1747 = vst.msk [vmem:[%s171_s30] ss:$2 sm:$0x3] %vm2705_vm0, %v1746_v51 }
 0x4c9   : > { %1756 = vst.msk [vmem:[%s1755_s23] ss:$2 sm:$0x3] %vm2705_vm0, %v1201_v52 }
 0x4ca PF: > { %s160_s4 = sadd.s32 1, %s2504_s4  }
 0x4cb   : > { %p157_p11 = scmp.ge.s32.totalorder %s160_s4, 5  }
 0x4cc   :  { %s2520_s19 = smov (%p157_p11), [#allocation17]   ;;  %s2521_s10 = smov (%p157_p11), [#allocation18]  }
 0x4cd   :  { %159 = sbr.rel (!%p157_p11) target bundleno = 126 (0x7e), region = 133  ;;  %s1765_s24 = sshll.u32 (%p157_p11), %s2520_s19, 4  ;;  %s1766_s24 = int_to_ptr.vmem [resolvable:$true] %s1765_s24 }
 0x4ce   :  { %s1775_s17 = sshll.u32 (%p157_p11), %s2521_s10, 4  ;;  %s2440_s25 = scalar_lea.vmem (%p157_p11), %s1766_s24, 128  ;;  %s1776_s17 = int_to_ptr.vmem [resolvable:$true] %s1775_s17 }
 0x4cf   :  { %p2441_p12 = scmp.ne.s32.totalorder (%p157_p11), %s1766_s24, %s2440_s25  ;;  %p2445_p13 = scmp.lt.s32.totalorder (%p157_p11), %s1766_s24, %s1766_s24 }
 0x4d0   :  { %p2446_p0 = scmp.lt.s32.totalorder (%p157_p11), %s2440_s25, %s2440_s25 }
 0x4d2   :  { %p2447_p1 = por (%p157_p11), %p2446_p0, %p2445_p13 }
 0x4d4   :  { %p2448_p2 = pnand %p2447_p1, %p2441_p12 }
 0x4d6   :  { %2451 = shalt.err (!%p2448_p2)
}
 0x4d7   :  { %s2452_s26 = scalar_lea.hbm %s2869_s14, 128 }
 0x4d8   :  { %p2453_p3 = scmp.ne.s32.totalorder %s2869_s14, %s2452_s26  ;;  %p2456_p4 = scmp.lt.u32.totalorder %s2452_s26, %s2869_s14 }
 0x4da   :  { %p2458_p5 = pnand %p2456_p4, %p2453_p3 }
 0x4dc   :  { %2461 = shalt.err (!%p2458_p5)
}
 0x4dd   :  { %1768 = dma.vmem_to_hbm [thread:$0]  %s1766_s24, 128, %s2869_s14, [#allocation6]  }
 0x4de   :  { %s2462_s11 = scalar_lea.vmem %s1776_s17, 128  ;;  %p2467_p7 = scmp.lt.s32.totalorder %s1776_s17, %s1776_s17 }
 0x4df   :  { %p2463_p6 = scmp.ne.s32.totalorder %s1776_s17, %s2462_s11  ;;  %p2468_p8 = scmp.lt.s32.totalorder %s2462_s11, %s2462_s11 }
 0x4e1   :  { %p2469_p9 = por %p2468_p8, %p2467_p7 }
 0x4e3   :  { %p2470_p10 = pnand %p2469_p9, %p2463_p6 }
 0x4e5   :  { %2473 = shalt.err (!%p2470_p10)
}
 0x4e6   :  { %s2474_s1 = scalar_lea.hbm %s2870_s15, 128 }
 0x4e7   :  { %p2475_p11 = scmp.ne.s32.totalorder %s2870_s15, %s2474_s1  ;;  %p2478_p12 = scmp.lt.u32.totalorder %s2474_s1, %s2870_s15 }
 0x4e9   :  { %p2480_p13 = pnand %p2478_p12, %p2475_p11 }
 0x4eb   :  { %2483 = shalt.err (!%p2480_p13)
}
 0x4ec   :  { %1778 = dma.vmem_to_hbm [thread:$0]  %s1776_s17, 128, %s2870_s15, [#allocation19]  }
 0x4ed   :  { %2498 = dma.done.wait [#allocation6], 128  }
 0x4ee   :  { %2499 = vsyncadd [#allocation6], 4294967168 }
 0x4ef   :  { %2500 = dma.done.wait [#allocation19], 128  }
 0x4f0   :  { %2501 = vsyncadd [#allocation19], 4294967168 }
 0x4f1   :  { %1785 = vsyncpa [#allocation5], 1 }
 0x4f2   :  { %1786 = vsyncpa [#allocation10], 1 }
 0x4f3   :  { %1787 = vsyncpa [#allocation13], 1 }
 0x4f4   :  { %1788 = vsyncpa [#allocation16], 1 }
 0x4f5   :  { %1789 = vsyncpa [#allocation6], 1 }
 0x4f6   :  { %1790 = vsyncpa [#allocation19], 1 }
 0x4f7   :  { %1791 = vsyncpa [#allocation7], 1 }

</bundles_post_ra>
